<compile_context>
chip_gen: v5e
topology: v5e:2x2
jax: 0.10.0
libtpu: 0.0.40
codegen_flags: <defaults>
</compile_context>

<pallas_src>
import jax
import jax.numpy as jnp
from jax.experimental import pallas as pl
from jax.experimental.pallas import tpu as pltpu


# ---------------------------------------------------------------------------
# Synthetic stand-ins for the undefined helper functions.  calculate_r41 (and
# every other eps-independent factor) only runs on the host, once (__init__).
# ---------------------------------------------------------------------------
_W0 = 5.0        # resonance frequency (arb. units)
_GAMMA = 0.3     # damping


def calculate_r41(w):
    # Lorentzian-magnitude electro-optic coefficient (real-valued analogue, >0).
    x = w / _W0
    return 1.0 / jnp.sqrt((1.0 - x * x) ** 2 + (_GAMMA * x) ** 2)


# ---------------------------------------------------------------------------
# Pallas kernel: the eps-dependent part of forward() for a block of candidates.
#   eps_ref   : (Bt, N)  candidate eps vectors (batch on sublanes, N on lanes)
#   const_ref : (2,  N)  row 0: pre_a = |FTY1|*(1+(w/W0)^2)/(2*r41)
#                        row 1: b_norm = |FTY2| / max|FTY2|
#   o_ref     : (Bt, 1)  per-candidate loss
# All ops are batched over Bt; the only per-candidate scalars are the (Bt,1)
# reduction results (max, sum), kept as one vector — no Python unroll.
# ---------------------------------------------------------------------------
def opt_loss_kernel(eps_ref, const_ref, o_ref):
    pre_a = const_ref[0:1, :]        # (1, N), broadcasts over the batch
    b_norm = const_ref[1:2, :]       # (1, N)

    n = jnp.sqrt(jnp.abs(eps_ref[...]))          # calculate_n(w, eps) stand-in
    a = pre_a * (1.0 + n)                        # == |FTY1 / (G * r41)|, prefolded

    # Exact per-candidate 1/max(a) (kept exact so the reference tolerance
    # holds).  The 1e-30 guard is a documented divergence from the reference,
    # which would produce NaN/inf in the degenerate all-zero case.
    max_a = jnp.max(a, axis=1, keepdims=True)            # (Bt, 1)
    inv_max_a = 1.0 / jnp.maximum(max_a, 1e-30)

    d = a * inv_max_a - b_norm
    s = jnp.sum(d * d, axis=1, keepdims=True)            # (Bt, 1)
    o_ref[...] = s * (1.0 / float(eps_ref.shape[1]))     # mean over N


def _choose_block_b(batch, n):
    # Candidates per block: multiple of 8 (sublane tiling), eps block <= ~4 MiB
    # so double-buffering + constants stay well under the default scoped-VMEM
    # limit on v5e/v6e and under v7x's smaller 64 MiB physical VMEM.
    cap = max(8, ((4 << 20) // (4 * n)) // 8 * 8)
    b8 = ((batch + 7) // 8) * 8
    return min(b8, cap)


# ---------------------------------------------------------------------------
# Factory == nn.Module.__init__: precompute constants once, return jitted loss.
# ---------------------------------------------------------------------------
def make_opt_network_loss(w, fty1, fty2):
    w = jnp.asarray(w, jnp.float32)
    fty1 = jnp.asarray(fty1, jnp.float32)
    fty2 = jnp.asarray(fty2, jnp.float32)
    n_freq = w.shape[0]

    r41 = calculate_r41(w)                                   # __init__ constant
    # |FTY1 / R| = |FTY1| * (1 + n) * (1 + (w/W0)^2) / (2 * r41)   (r41 > 0)
    # TODO(synk): re-derive this folding when the real calculate_G / calculate_r41
    # (possibly complex / sign-changing) formulas are available.
    pre_a = jnp.abs(fty1) * (1.0 + (w / _W0) ** 2) / (2.0 * r41)
    abs_f2 = jnp.abs(fty2)
    b_norm = abs_f2 / jnp.maximum(jnp.max(abs_f2), 1e-30)
    consts = jnp.stack([pre_a, b_norm], axis=0)              # (2, N), one input

    def loss_fn(eps_batch):
        eps_batch = jnp.asarray(eps_batch, jnp.float32)
        if eps_batch.ndim == 1:          # single candidate == module forward()
            eps_batch = eps_batch[None, :]
        batch, n_in = eps_batch.shape
        assert n_in == n_freq, "eps length must match w/FTY1/FTY2"

        bt = _choose_block_b(batch, n_in)
        bp = ((batch + bt - 1) // bt) * bt
        if bp != batch:                  # pad batch with copies of row 0 (finite,
            pad = jnp.broadcast_to(eps_batch[:1], (bp - batch, n_in))  # sliced off)
            eps_p = jnp.concatenate([eps_batch, pad], axis=0)
        else:
            eps_p = eps_batch

        out = pl.pallas_call(
            opt_loss_kernel,
            out_shape=jax.ShapeDtypeStruct((bp, 1), jnp.float32),
            grid=(bp // bt,),
            in_specs=[
                pl.BlockSpec((bt, n_in), lambda i: (i, 0)),   # eps candidates
                pl.BlockSpec((2, n_in), lambda i: (0, 0)),    # packed constants
            ],
            out_specs=pl.BlockSpec((bt, 1), lambda i: (i, 0)),
            compiler_params=pltpu.CompilerParams(
                dimension_semantics=("parallel",)),           # v7x 2-TC sharding
        )(eps_p, consts)
        return out[:batch, 0]

    return jax.jit(loss_fn)


# Pure-JAX reference mirroring the PyTorch forward (unfused, no folding).
def opt_network_loss_ref(eps, w, fty1, fty2):
    r41 = calculate_r41(w)
    n = jnp.sqrt(jnp.abs(eps))                                   # calculate_n
    G = (2.0 / (1.0 + n)) * (1.0 / (1.0 + (w / _W0) ** 2))       # calculate_G
    R = G * r41
    a = jnp.abs(fty1 / R)
    b = jnp.abs(fty2)
    d = a / jnp.max(a) - b / jnp.max(b)
    return jnp.mean(d * d)


if __name__ == "__main__":
    N = 1024   # frequency samples
    B = 64     # batch of eps candidates evaluated in ONE pallas_call
    key = jax.random.PRNGKey(0)
    k_eps, k_pert, k_f1, k_f2 = jax.random.split(key, 4)

    w = jnp.linspace(0.1, 10.0, N, dtype=jnp.float32)
    eps = 10.0 + jax.random.normal(k_eps, (N,), dtype=jnp.float32)
    fty1 = jax.random.normal(k_f1, (N,), dtype=jnp.float32)
    fty2 = jax.random.normal(k_f2, (N,), dtype=jnp.float32)

    pert = 0.05 * jax.random.normal(k_pert, (B, N), dtype=jnp.float32)
    eps_batch = eps[None, :] * (1.0 + pert)

    loss_fn = make_opt_network_loss(w, fty1, fty2)   # __init__ (constants once)

    # Batched evaluation: all B candidates in one launch.
    losses = loss_fn(eps_batch)
    jax.block_until_ready(losses)
    assert losses.shape == (B,)

    refs = jax.vmap(lambda e: opt_network_loss_ref(e, w, fty1, fty2))(eps_batch)
    assert jnp.allclose(losses, refs, rtol=1e-4, atol=1e-6), (losses, refs)

    # Single-candidate path == the module's forward() (exercises batch padding).
    loss_single = loss_fn(eps)
    jax.block_until_ready(loss_single)
    ref_single = opt_network_loss_ref(eps, w, fty1, fty2)
    assert jnp.allclose(loss_single[0], ref_single, rtol=1e-4, atol=1e-6), (
        loss_single, ref_single)

    print("KERNEL_OK")
</pallas_src>

<mosaic_0001>
module attributes {stable_mosaic.version = 11 : i64} {
  func.func @opt_loss_kernel(%arg0: i32, %arg1: memref<64x1024xf32, #tpu.memory_space<vmem>>, %arg2: memref<2x1024xf32, #tpu.memory_space<vmem>>, %arg3: memref<64x1xf32, #tpu.memory_space<vmem>>) attributes {dimension_semantics = [#tpu.dimension_semantics<parallel>], iteration_bounds = array<i64: 1>, scalar_prefetch = 0 : i64, scratch_operands = 0 : i64, tpu.core_type = #tpu.core_type<tc>, window_params = [{transform_indices = @transform_0, window_bounds = array<i64: 64, 1024>}, {pipeline_mode = #tpu.pipeline_mode<synchronous>, transform_indices = @transform_1, window_bounds = array<i64: 2, 1024>}, {transform_indices = @transform_2, window_bounds = array<i64: 64, 1>}]} {
    %c0 = arith.constant 0 : index
    %c0_0 = arith.constant 0 : index
    %0 = vector.load %arg2[%c0, %c0_0] : memref<2x1024xf32, #tpu.memory_space<vmem>>, vector<1x1024xf32>
    %c1 = arith.constant 1 : index
    %c0_1 = arith.constant 0 : index
    %1 = vector.load %arg2[%c1, %c0_1] : memref<2x1024xf32, #tpu.memory_space<vmem>>, vector<1x1024xf32>
    %c0_2 = arith.constant 0 : index
    %c0_3 = arith.constant 0 : index
    %2 = vector.load %arg1[%c0_2, %c0_3] : memref<64x1024xf32, #tpu.memory_space<vmem>>, vector<64x1024xf32>
    %3 = math.absf %2 : vector<64x1024xf32>
    %4 = math.sqrt %3 : vector<64x1024xf32>
    %cst = arith.constant 1.000000e+00 : f32
    %5 = vector.broadcast %cst : f32 to vector<64x1024xf32>
    %6 = arith.addf %5, %4 : vector<64x1024xf32>
    %7 = vector.broadcast %0 : vector<1x1024xf32> to vector<64x1024xf32>
    %8 = arith.mulf %7, %6 : vector<64x1024xf32>
    %cst_4 = arith.constant dense<0xFF800000> : vector<64xf32>
    %9 = vector.multi_reduction <maximumf>, %8, %cst_4 [1] : vector<64x1024xf32> to vector<64xf32>
    %10 = vector.shape_cast %9 : vector<64xf32> to vector<64x1xf32>
    %cst_5 = arith.constant 1.000000e-30 : f32
    %11 = vector.broadcast %cst_5 : f32 to vector<64x1xf32>
    %12 = arith.maximumf %10, %11 : vector<64x1xf32>
    %cst_6 = arith.constant 1.000000e+00 : f32
    %13 = vector.broadcast %cst_6 : f32 to vector<64x1xf32>
    %14 = arith.divf %13, %12 : vector<64x1xf32>
    %15 = vector.broadcast %14 : vector<64x1xf32> to vector<64x1024xf32>
    %16 = arith.mulf %8, %15 : vector<64x1024xf32>
    %17 = vector.broadcast %1 : vector<1x1024xf32> to vector<64x1024xf32>
    %18 = arith.subf %16, %17 : vector<64x1024xf32>
    %19 = arith.mulf %18, %18 : vector<64x1024xf32>
    %cst_7 = arith.constant dense<0.000000e+00> : vector<64xf32>
    %20 = vector.multi_reduction <add>, %19, %cst_7 [1] : vector<64x1024xf32> to vector<64xf32>
    %21 = vector.shape_cast %20 : vector<64xf32> to vector<64x1xf32>
    %cst_8 = arith.constant 9.765625E-4 : f32
    %22 = vector.broadcast %cst_8 : f32 to vector<64x1xf32>
    %23 = arith.mulf %21, %22 : vector<64x1xf32>
    %c0_9 = arith.constant 0 : index
    %c0_10 = arith.constant 0 : index
    %24 = vector.load %arg3[%c0_9, %c0_10] : memref<64x1xf32, #tpu.memory_space<vmem>>, vector<64x1xf32>
    tpu.vector_store %arg3[%c0_9, %c0_10], %23 {strides = array<i32>} : memref<64x1xf32, #tpu.memory_space<vmem>>, vector<64x1xf32>,
    return
  }
  func.func @transform_0(%arg0: i32) -> (i32, i32) {
    %c0_i32 = arith.constant 0 : i32
    %c0_i32_0 = arith.constant 0 : i32
    return %arg0, %c0_i32 : i32, i32
  }
  func.func @transform_1(%arg0: i32) -> (i32, i32) {
    %c0_i32 = arith.constant 0 : i32
    %c0_i32_0 = arith.constant 0 : i32
    %c0_i32_1 = arith.constant 0 : i32
    return %c0_i32, %c0_i32_0 : i32, i32
  }
  func.func @transform_2(%arg0: i32) -> (i32, i32) {
    %c0_i32 = arith.constant 0 : i32
    %c0_i32_0 = arith.constant 0 : i32
    return %arg0, %c0_i32 : i32, i32
  }
}

</mosaic_0001>

<bundles_post_ra>
// kernel: loss_fn.1
= control target key start
LH: loop header
LB: loop body
LE: loop exit
PB: predicated region body
PF: predicated region fallthrough
CT: control target
= control target key end

     0   :  { %7 = vsyncpa [#allocation3], 0  ;;  %s3433_s0 = inlined_call_operand.hbm [shape: f32[64,1024], index: 0, kind: input, shape index: {}]   ;;  %s3434_s1 = inlined_call_operand.hbm [shape: f32[2,1024], index: 1, kind: input, shape index: {}]   ;;  %s3435_s2 = inlined_call_operand.vmem [shape: f32[64,1], index: 2, kind: output, shape index: {}]  }
   0x1   :  { %s13_s11 = sshll.u32 %s3433_s0, 4  ;;  %s14_s11 = int_to_ptr.hbm [resolvable:$true] %s13_s11 }
   0x2   :  { %8 = vsyncpa [#allocation5], 0  ;;  %s1789_s12 = smov [#allocation2]   ;;  %s27_s16 = sshll.u32 %s3434_s1, 4  ;;  %s28_s16 = int_to_ptr.hbm [resolvable:$true] %s27_s16 }
   0x3   :  { %s15_s13 = sshll.u32 %s1789_s12, 4  ;;  %s1790_s17 = smov 1024   ;;  %s16_s13 = int_to_ptr.vmem [resolvable:$true] %s15_s13 }
   0x4   :  { %s1791_s18 = smov 64   ;;  %s1792_s19 = smov [#allocation4]  }
   0x5   :  { %21 = dma.hbm_to_vmem [thread:$0]  %s14_s11, 8192, %s16_s13, [#allocation3], %s1790_s17, %s1790_s17, %s1791_s18  }
   0x6   :  { %s29_s20 = sshll.u32 %s1792_s19, 4  ;;  %s30_s20 = int_to_ptr.vmem [resolvable:$true] %s29_s20 }
   0x7   :  { %32 = dma.hbm_to_vmem [thread:$0]  %s28_s16, 256, %s30_s20, [#allocation5]  }
   0x8   :  { %1785 = dma.done.wait [#allocation3], 8192  }
   0x9   :  { %1786 = vsyncadd [#allocation3], 4294959104 }
   0xa   :  { %1787 = dma.done.wait [#allocation5], 256  }
   0xb   :  { %1788 = vsyncadd [#allocation5], 4294967040  ;;  %v76_v0 = vld [vmem:[#allocation2 + $0x100] sm:$0xff]  ;;  %v77_v1 = vld [vmem:[#allocation2 + $0x108] sm:$0xff] }
   0xc   :  { %v78_v2 = vld [vmem:[#allocation2 + $0x110] sm:$0xff]  ;;  %v79_v3 = vld [vmem:[#allocation2 + $0x118] sm:$0xff]  ;;  %v80_v4 = vld [vmem:[#allocation2 + $0x120] sm:$0xff]  ;;  %v1814_v5 = vand.u32 2147483647, %v76_v0 }
   0xd   :  { %v81_v6 = vld [vmem:[#allocation2 + $0x128] sm:$0xff]  ;;  %v1816_v7 = vand.u32 2147483647, %v77_v1  ;;  %v82_v8 = vld [vmem:[#allocation2 + $0x130] sm:$0xff]  ;;  %v1818_v9 = vand.u32 2147483647, %v78_v2 }
   0xe   :  { %v1820_v10 = vand.u32 2147483647, %v79_v3  ;;  %1593 = vrsqrt.f32 %v1814_v5  ;;  %v1823_v11 = vand.u32 2147483647, %v80_v4  ;;  %v83_v12 = vld [vmem:[#allocation2 + $0x138] sm:$0xff]  ;;  %vm563_vm0 = vcmp.eq.f32.partialorder %v1814_v5, inf }
   0xf   :  { %1595 = vrsqrt.f32 %v1816_v7  ;;  %v1826_v13 = vand.u32 2147483647, %v81_v6  ;;  %v1828_v14 = vand.u32 2147483647, %v82_v8  ;;  %v1831_v15 = vld [vmem:[#allocation4] ss:$2 sm:$0xff] }
  0x10   :  { %1597 = vrsqrt.f32 %v1818_v9  ;;  %v1834_v16 = vand.u32 2147483647, %v83_v12  ;;  %v1841_v20 = vperm.slane %v1831_v15, 0  ;;  %v566_v21 = vand.u32 2147483648, %v1814_v5 }
  0x11   :  { %1599 = vrsqrt.f32 %v1820_v10  ;;  %v1847_v23 = vperm.slane %v1831_v15, 1  ;;  %vm565_vm1 = vcmp.eq.f32.partialorder %v1814_v5, 0.0  ;;  %vm575_vm2 = vcmp.eq.f32.partialorder %v1816_v7, inf }
  0x12   :  { %1601 = vrsqrt.f32 %v1823_v11  ;;  %v578_v26 = vand.u32 2147483648, %v1816_v7  ;;  %v590_v27 = vand.u32 2147483648, %v1818_v9  ;;  %vm577_vm3 = vcmp.eq.f32.partialorder %v1816_v7, 0.0 }
  0x13   :  { %1603 = vrsqrt.f32 %v1826_v13  ;;  %v602_v31 = vand.u32 2147483648, %v1820_v10  ;;  %v614_v32 = vand.u32 2147483648, %v1823_v11  ;;  %vm587_vm4 = vcmp.eq.f32.partialorder %v1818_v9, inf }
  0x14   :  { %v1594_v17 = vpop.eup %1593  ;;  %1605 = vrsqrt.f32 %v1828_v14  ;;  %v626_v36 = vand.u32 2147483648, %v1826_v13  ;;  %v638_v37 = vand.u32 2147483648, %v1828_v14  ;;  %vm589_vm5 = vcmp.eq.f32.partialorder %v1818_v9, 0.0 }
  0x15   :  { %v1596_v18 = vpop.eup %1595  ;;  %v557_v19 = vmul.f32 %v1594_v17, %v1814_v5  ;;  %1607 = vrsqrt.f32 %v1834_v16  ;;  %vm599_vm6 = vcmp.eq.f32.partialorder %v1820_v10, inf  ;;  %v650_v42 = vand.u32 2147483648, %v1834_v16 }
  0x16   :  { %v569_v22 = vmul.f32 %v1596_v18, %v1816_v7  ;;  %v1598_v24 = vpop.eup %1597  ;;  %vm601_vm7 = vcmp.eq.f32.partialorder %v1820_v10, 0.0  ;;  %vm611_vm8 = vcmp.eq.f32.partialorder %v1823_v11, inf  ;;  %v1870_v47 = vperm.slane %v1831_v15, 2 }
  0x17   :  { %v558_v25 = vmul.f32 %v1594_v17, %v557_v19  ;;  %v1600_v28 = vpop.eup %1599  ;;  %v581_v30 = vmul.f32 %v1598_v24, %v1818_v9  ;;  %vm613_vm9 = vcmp.eq.f32.partialorder %v1823_v11, 0.0  ;;  %vm623_vm10 = vcmp.eq.f32.partialorder %v1826_v13, inf }
  0x18   :  { %v570_v29 = vmul.f32 %v1596_v18, %v569_v22  ;;  %v1602_v33 = vpop.eup %1601  ;;  %v593_v35 = vmul.f32 %v1600_v28, %v1820_v10  ;;  %vm625_vm11 = vcmp.eq.f32.partialorder %v1826_v13, 0.0  ;;  %v1877_v56 = vperm.slane %v1831_v15, 3 }
  0x19   :  { %v559_v34 = vmul.f32 0.5, %v558_v25  ;;  %v1604_v38 = vpop.eup %1603  ;;  %v582_v40 = vmul.f32 %v1598_v24, %v581_v30  ;;  %v605_v41 = vmul.f32 %v1602_v33, %v1823_v11  ;;  %vm635_vm12 = vcmp.eq.f32.partialorder %v1828_v14, inf }
  0x1a   :  { %v571_v39 = vmul.f32 0.5, %v570_v29  ;;  %v1606_v43 = vpop.eup %1605  ;;  %v594_v45 = vmul.f32 %v1600_v28, %v593_v35  ;;  %v617_v46 = vmul.f32 %v1604_v38, %v1826_v13  ;;  %vm637_vm13 = vcmp.eq.f32.partialorder %v1828_v14, 0.0 }
  0x1b   :  { %v560_v44 = vsub.f32 1.5, %v559_v34  ;;  %v583_v49 = vmul.f32 0.5, %v582_v40  ;;  %v606_v50 = vmul.f32 %v1602_v33, %v605_v41  ;;  %v629_v51 = vmul.f32 %v1606_v43, %v1828_v14  ;;  %v1608_v52 = vpop.eup %1607 }
  0x1c   :  { %v572_v48 = vsub.f32 1.5, %v571_v39  ;;  %v595_v54 = vmul.f32 0.5, %v594_v45  ;;  %v618_v55 = vmul.f32 %v1604_v38, %v617_v46  ;;  %v641_v0 = vmul.f32 %v1608_v52, %v1834_v16 }
  0x1d   :  { %v561_v53 = vmul.f32 %v1594_v17, %v560_v44  ;;  %v584_v58 = vsub.f32 1.5, %v583_v49  ;;  %v607_v59 = vmul.f32 0.5, %v606_v50  ;;  %v630_v60 = vmul.f32 %v1606_v43, %v629_v51  ;;  %v60_v51 = vld [vmem:[#allocation2 + $0x80] sm:$0xff] }
  0x1e   :  { %v573_v57 = vmul.f32 %v1596_v18, %v572_v48  ;;  %v596_v62 = vsub.f32 1.5, %v595_v54  ;;  %v619_v63 = vmul.f32 0.5, %v618_v55  ;;  %v642_v17 = vmul.f32 %v1608_v52, %v641_v0 }
  0x1f   :  { %v562_v61 = vmul.f32 %v561_v53, %v1814_v5  ;;  %v585_v2 = vmul.f32 %v1598_v24, %v584_v58  ;;  %v608_v3 = vsub.f32 1.5, %v607_v59  ;;  %v631_v4 = vmul.f32 0.5, %v630_v60  ;;  %v61_v53 = vld [vmem:[#allocation2 + $0x88] sm:$0xff]  ;;  %v62_v59 = vld [vmem:[#allocation2 + $0x90] sm:$0xff]  ;;  %v63_v60 = vld [vmem:[#allocation2 + $0x98] sm:$0xff] }
  0x20   :  { %v574_v1 = vmul.f32 %v573_v57, %v1816_v7  ;;  %v597_v8 = vmul.f32 %v1600_v28, %v596_v62  ;;  %v620_v12 = vsub.f32 1.5, %v619_v63  ;;  %vm647_vm14 = vcmp.eq.f32.partialorder %v1834_v16, inf }
  0x21   :  { %v564_v6 = vsel %vm563_vm0, %v1814_v5, %v562_v61  ;;  %v586_v22 = vmul.f32 %v585_v2, %v1818_v9  ;;  %v609_v24 = vmul.f32 %v1602_v33, %v608_v3  ;;  %v632_v30 = vsub.f32 1.5, %v631_v4  ;;  %v64_v3 = vld [vmem:[#allocation2 + $0xa0] sm:$0xff] }
  0x22   :  { %v567_v18 = vsel %vm565_vm1, %v566_v21, %v564_v6  ;;  %v576_v19 = vsel %vm575_vm2, %v1816_v7, %v574_v1  ;;  %v598_v28 = vmul.f32 %v597_v8, %v1820_v10  ;;  %v621_v29 = vmul.f32 %v1604_v38, %v620_v12  ;;  %v65_v6 = vld [vmem:[#allocation2 + $0xa8] sm:$0xff] }
  0x23   :  { %v579_v25 = vsel %vm577_vm3, %v578_v26, %v576_v19  ;;  %v588_v5 = vsel %vm587_vm4, %v1818_v9, %v586_v22  ;;  %v610_v21 = vmul.f32 %v609_v24, %v1823_v11  ;;  %v643_v34 = vmul.f32 0.5, %v642_v17  ;;  %v67_v24 = vld [vmem:[#allocation2 + $0xb8] sm:$0xff] }
  0x24   :  { %v972_v35 = vadd.f32 1.0, %v567_v18  ;;  %v591_v33 = vsel %vm589_vm5, %v590_v27, %v588_v5  ;;  %v600_v7 = vsel %vm599_vm6, %v1820_v10, %v598_v28  ;;  %v622_v26 = vmul.f32 %v621_v29, %v1826_v13 }
  0x25   :  { %v633_v38 = vmul.f32 %v1606_v43, %v632_v30  ;;  %v603_v39 = vsel %vm601_vm7, %v602_v31, %v600_v7  ;;  %v612_v40 = vsel %vm611_vm8, %v1823_v11, %v610_v21  ;;  %v644_v41 = vsub.f32 1.5, %v643_v34 }
  0x26   :  { %v973_v44 = vadd.f32 1.0, %v579_v25  ;;  %v615_v9 = vsel %vm613_vm9, %v614_v32, %v612_v40  ;;  %v624_v27 = vsel %vm623_vm10, %v1826_v13, %v622_v26  ;;  %v974_v45 = vadd.f32 1.0, %v591_v33 }
  0x27   :  { %v634_v43 = vmul.f32 %v633_v38, %v1828_v14  ;;  %v627_v10 = vsel %vm625_vm11, %v626_v36, %v624_v27  ;;  %v645_v31 = vmul.f32 %v1608_v52, %v644_v41  ;;  %v975_v46 = vadd.f32 1.0, %v603_v39 }
  0x28   :  { %v1933_v48 = vperm.slane %v1831_v15, 4  ;;  %v976_v32 = vadd.f32 1.0, %v615_v9  ;;  %v1939_v49 = vmul.f32 %v1841_v20, %v972_v35  ;;  %v1942_v50 = vmul.f32 %v1847_v23, %v973_v44 }
  0x29   :  { %v636_v11 = vsel %vm635_vm12, %v1828_v14, %v634_v43  ;;  %v646_v36 = vmul.f32 %v645_v31, %v1834_v16  ;;  %vm649_vm15 = vcmp.eq.f32.partialorder %v1834_v16, 0.0  ;;  %v1951_v52 = vmul.f32 %v1870_v47, %v974_v45 }
  0x2a   :  { %3476 = vst [vmem:[#allocation8_spill] sm:$0xff] %v1939_v49  ;;  %v639_v13 = vsel %vm637_vm13, %v638_v37, %v636_v11  ;;  %v977_v54 = vadd.f32 1.0, %v627_v10  ;;  %v1954_v55 = vperm.slane %v1831_v15, 5  ;;  %v1957_v57 = vmul.f32 %v1877_v56, %v975_v46 }
  0x2b   :  { %3477 = vst [vmem:[#allocation9_spill] sm:$0xff] %v1942_v50  ;;  %v1121_v58 = vmax.f32 %v1939_v49, %v1942_v50  ;;  %v648_v14 = vsel %vm647_vm14, %v1834_v16, %v646_v36  ;;  %v1965_v37 = vperm.slane %v1831_v15, 6  ;;  %v1967_v61 = vand.u32 2147483647, %v60_v51 }
  0x2c   :  { %3478 = vst [vmem:[#allocation10_spill] sm:$0xff] %v1951_v52  ;;  %v1969_v62 = vand.u32 2147483647, %v61_v53  ;;  %v651_v63 = vsel %vm649_vm15, %v650_v42, %v648_v14  ;;  %v978_v0 = vadd.f32 1.0, %v639_v13  ;;  %v1974_v1 = vmul.f32 %v1933_v48, %v976_v32  ;;  %v66_v42 = vld [vmem:[#allocation2 + $0xb0] sm:$0xff] }
  0x2d   :  { %3479 = vst [vmem:[#allocation11_spill] sm:$0xff] %v1957_v57  ;;  %v1122_v2 = vmax.f32 %v1121_v58, %v1951_v52  ;;  %v1978_v4 = vperm.slane %v1831_v15, 7  ;;  %v1980_v8 = vand.u32 2147483647, %v62_v59  ;;  %1609 = vrsqrt.f32 %v1967_v61 }
  0x2e   :  { %3480 = vst [vmem:[#allocation12_spill] sm:$0xff] %v1974_v1  ;;  %v979_v12 = vadd.f32 1.0, %v651_v63  ;;  %v1984_v17 = vmul.f32 %v1954_v55, %v977_v54  ;;  %v1987_v18 = vand.u32 2147483647, %v63_v60  ;;  %v1989_v19 = vand.u32 2147483647, %v64_v3 }
  0x2f   :  { %v1123_v16 = vmax.f32 %v1122_v2, %v1957_v57  ;;  %1611 = vrsqrt.f32 %v1969_v62  ;;  %v1993_v15 = vmul.f32 %v1965_v37, %v978_v0  ;;  %v1996_v25 = vand.u32 2147483647, %v65_v6 }
  0x30   :  { %3481 = vst [vmem:[#allocation13_spill] sm:$0xff] %v1984_v17  ;;  %v1998_v28 = vand.u32 2147483647, %v66_v42  ;;  %1613 = vrsqrt.f32 %v1980_v8  ;;  %v2002_v29 = vmul.f32 %v1978_v4, %v979_v12  ;;  %v2006_v21 = vand.u32 2147483647, %v67_v24 }
  0x31   :  { %3482 = vst [vmem:[#allocation14_spill] sm:$0xff] %v1993_v15  ;;  %v1124_v22 = vmax.f32 %v1123_v16, %v1974_v1  ;;  %1615 = vrsqrt.f32 %v1987_v18  ;;  %vm371_vm0 = vcmp.eq.f32.partialorder %v1967_v61, inf  ;;  %vm373_vm1 = vcmp.eq.f32.partialorder %v1967_v61, 0.0 }
  0x32   :  { %3483 = vst [vmem:[#allocation15_spill] sm:$0xff] %v2002_v29  ;;  %1617 = vrsqrt.f32 %v1989_v19  ;;  %v374_v40 = vand.u32 2147483648, %v1967_v61  ;;  %vm383_vm2 = vcmp.eq.f32.partialorder %v1969_v62, inf  ;;  %vm385_vm3 = vcmp.eq.f32.partialorder %v1969_v62, 0.0 }
  0x33   :  { %v1125_v30 = vmax.f32 %v1124_v22, %v1984_v17  ;;  %v1610_v5 = vpop.eup %1609  ;;  %1619 = vrsqrt.f32 %v1996_v25  ;;  %v386_v27 = vand.u32 2147483648, %v1969_v62  ;;  %vm395_vm4 = vcmp.eq.f32.partialorder %v1980_v8, inf }
  0x34   :  { %v365_v35 = vmul.f32 %v1610_v5, %v1967_v61  ;;  %1621 = vrsqrt.f32 %v1998_v28  ;;  %v398_v10 = vand.u32 2147483648, %v1980_v8  ;;  %v410_v46 = vand.u32 2147483648, %v1987_v18 }
  0x35   :  { %v1126_v34 = vmax.f32 %v1125_v30, %v1993_v15  ;;  %v1612_v33 = vpop.eup %1611  ;;  %1623 = vrsqrt.f32 %v2006_v21  ;;  %v422_v11 = vand.u32 2147483648, %v1989_v19  ;;  %vm397_vm5 = vcmp.eq.f32.partialorder %v1980_v8, 0.0 }
  0x36   :  { %v366_v26 = vmul.f32 %v1610_v5, %v365_v35  ;;  %v377_v38 = vmul.f32 %v1612_v33, %v1969_v62  ;;  %v1614_v39 = vpop.eup %1613  ;;  %vm407_vm6 = vcmp.eq.f32.partialorder %v1987_v18, inf  ;;  %vm409_vm7 = vcmp.eq.f32.partialorder %v1987_v18, 0.0 }
  0x37   :  { %v1127_v7 = vmax.f32 %v1126_v34, %v2002_v29  ;;  %v1616_v41 = vpop.eup %1615  ;;  %v389_v43 = vmul.f32 %v1614_v39, %v1980_v8  ;;  %vm419_vm8 = vcmp.eq.f32.partialorder %v1989_v19, inf  ;;  %v434_v14 = vand.u32 2147483648, %v1996_v25 }
  0x38   :  { %v367_v44 = vmul.f32 0.5, %v366_v26  ;;  %v378_v9 = vmul.f32 %v1612_v33, %v377_v38  ;;  %v1618_v45 = vpop.eup %1617  ;;  %v401_v31 = vmul.f32 %v1616_v41, %v1987_v18  ;;  %v446_v60 = vand.u32 2147483648, %v1998_v28 }
  0x39   :  { %1128 = vmax.xlane.f32.xlu2 %v1127_v7  ;;  %v1620_v32 = vpop.eup %1619  ;;  %v390_v13 = vmul.f32 %v1614_v39, %v389_v43  ;;  %v413_v36 = vmul.f32 %v1618_v45, %v1989_v19  ;;  %vm421_vm9 = vcmp.eq.f32.partialorder %v1989_v19, 0.0  ;;  %vm431_vm10 = vcmp.eq.f32.partialorder %v1996_v25, inf }
  0x3a   :  { %v368_v51 = vsub.f32 1.5, %v367_v44  ;;  %v379_v53 = vmul.f32 0.5, %v378_v9  ;;  %v1622_v54 = vpop.eup %1621  ;;  %v402_v58 = vmul.f32 %v1616_v41, %v401_v31  ;;  %v425_v59 = vmul.f32 %v1620_v32, %v1996_v25 }
  0x3b   :  { %v391_v2 = vmul.f32 0.5, %v390_v13  ;;  %v414_v3 = vmul.f32 %v1618_v45, %v413_v36  ;;  %v1624_v6 = vpop.eup %1623  ;;  %vm433_vm11 = vcmp.eq.f32.partialorder %v1996_v25, 0.0  ;;  %v437_v42 = vmul.f32 %v1622_v54, %v1998_v28 }
  0x3c   :  { %v369_v63 = vmul.f32 %v1610_v5, %v368_v51  ;;  %v380_v0 = vsub.f32 1.5, %v379_v53  ;;  %v403_v12 = vmul.f32 0.5, %v402_v58  ;;  %v426_v16 = vmul.f32 %v1620_v32, %v425_v59 }
  0x3d   :  { %v458_v22 = vand.u32 2147483648, %v2006_v21  ;;  %v392_v5 = vsub.f32 1.5, %v391_v2  ;;  %v415_v34 = vmul.f32 0.5, %v414_v3  ;;  %vm443_vm12 = vcmp.eq.f32.partialorder %v1998_v28, inf }
  0x3e   :  { %v370_v24 = vmul.f32 %v369_v63, %v1967_v61  ;;  %v381_v30 = vmul.f32 %v1612_v33, %v380_v0  ;;  %v404_v35 = vsub.f32 1.5, %v403_v12  ;;  %v427_v7 = vmul.f32 0.5, %v426_v16 }
  0x3f   :  { %v438_v26 = vmul.f32 %v1622_v54, %v437_v42  ;;  %vm445_vm13 = vcmp.eq.f32.partialorder %v1998_v28, 0.0  ;;  %v449_v38 = vmul.f32 %v1624_v6, %v2006_v21  ;;  %v393_v43 = vmul.f32 %v1614_v39, %v392_v5 }
  0x40   :  { %v372_v44 = vsel %vm371_vm0, %v1967_v61, %v370_v24  ;;  %v382_v9 = vmul.f32 %v381_v30, %v1969_v62  ;;  %v416_v31 = vsub.f32 1.5, %v415_v34  ;;  %v405_v51 = vmul.f32 %v1616_v41, %v404_v35 }
  0x41   :  { %v375_v33 = vsel %vm373_vm1, %v374_v40, %v372_v44  ;;  %v428_v53 = vsub.f32 1.5, %v427_v7  ;;  %v439_v13 = vmul.f32 0.5, %v438_v26  ;;  %vm455_vm14 = vcmp.eq.f32.partialorder %v2006_v21, inf  ;;  %v45_v7 = vld [vmem:[#allocation2 + $0x8] sm:$0xff] }
  0x42   :  { %v384_v36 = vsel %vm383_vm2, %v1969_v62, %v382_v9  ;;  %v394_v58 = vmul.f32 %v393_v43, %v1980_v8  ;;  %v417_v59 = vmul.f32 %v1618_v45, %v416_v31  ;;  %v450_v63 = vmul.f32 %v1624_v6, %v449_v38  ;;  %v46_v9 = vld [vmem:[#allocation2 + $0x10] sm:$0xff]  ;;  %v47_v43 = vld [vmem:[#allocation2 + $0x18] sm:$0xff] }
  0x43   :  { %v387_v39 = vsel %vm385_vm3, %v386_v27, %v384_v36  ;;  %v406_v0 = vmul.f32 %v405_v51, %v1987_v18  ;;  %v429_v61 = vmul.f32 %v1620_v32, %v428_v53  ;;  %v440_v40 = vsub.f32 1.5, %v439_v13  ;;  %v44_v32 = vld [vmem:[#allocation2] sm:$0xff] }
  0x44   :  { %v396_v41 = vsel %vm395_vm4, %v1980_v8, %v394_v58  ;;  %v418_v2 = vmul.f32 %v417_v59, %v1989_v19  ;;  %v451_v3 = vmul.f32 0.5, %v450_v63  ;;  %v956_v12 = vadd.f32 1.0, %v375_v33  ;;  %v48_v53 = vld [vmem:[#allocation2 + $0x20] sm:$0xff] }
  0x45   :  { %v399_v16 = vsel %vm397_vm5, %v398_v10, %v396_v41  ;;  %v408_v62 = vsel %vm407_vm6, %v1987_v18, %v406_v0  ;;  %v430_v27 = vmul.f32 %v429_v61, %v1996_v25  ;;  %v441_v45 = vmul.f32 %v1622_v54, %v440_v40  ;;  %v49_v0 = vld [vmem:[#allocation2 + $0x28] sm:$0xff]  ;;  %v50_v61 = vld [vmem:[#allocation2 + $0x30] sm:$0xff] }
  0x46   :  { %v411_v42 = vsel %vm409_vm7, %v410_v46, %v408_v62  ;;  %v420_v24 = vsel %vm419_vm8, %v1989_v19, %v418_v2  ;;  %v452_v30 = vsub.f32 1.5, %v451_v3  ;;  %v957_v8 = vadd.f32 1.0, %v387_v39 }
  0x47   :  { %v423_v10 = vsel %vm421_vm9, %v422_v11, %v420_v24  ;;  %v432_v54 = vsel %vm431_vm10, %v1996_v25, %v430_v27  ;;  %v442_v5 = vmul.f32 %v441_v45, %v1998_v28  ;;  %v958_v34 = vadd.f32 1.0, %v399_v16 }
  0x48   :  { %v435_v18 = vsel %vm433_vm11, %v434_v14, %v432_v54  ;;  %v453_v46 = vmul.f32 %v1624_v6, %v452_v30  ;;  %v959_v35 = vadd.f32 1.0, %v411_v42  ;;  %v2086_v26 = vand.u32 2147483647, %v44_v32 }
  0x49   :  { %v444_v19 = vsel %vm443_vm12, %v1998_v28, %v442_v5  ;;  %v960_v11 = vadd.f32 1.0, %v423_v10  ;;  %v2092_v38 = vmul.f32 %v1841_v20, %v956_v12  ;;  %v2095_v44 = vmul.f32 %v1847_v23, %v957_v8 }
  0x4a   :  { %v447_v25 = vsel %vm445_vm13, %v446_v60, %v444_v19  ;;  %v454_v14 = vmul.f32 %v453_v46, %v2006_v21  ;;  %vm457_vm15 = vcmp.eq.f32.partialorder %v2006_v21, 0.0  ;;  %v2104_v6 = vmul.f32 %v1870_v47, %v958_v34 }
  0x4b   :  { %v961_v31 = vadd.f32 1.0, %v435_v18  ;;  %v2107_v33 = vmul.f32 %v1877_v56, %v959_v35  ;;  %v1103_v51 = vmax.f32 %v2092_v38, %v2095_v44  ;;  %v2111_v13 = vand.u32 2147483647, %v45_v7 }
  0x4c   :  { %v456_v28 = vsel %vm455_vm14, %v2006_v21, %v454_v14  ;;  %v962_v60 = vadd.f32 1.0, %v447_v25  ;;  %v2116_v36 = vand.u32 2147483647, %v46_v9  ;;  %v2118_v58 = vand.u32 2147483647, %v47_v43  ;;  %v51_v21 = vld [vmem:[#allocation2 + $0x38] sm:$0xff] }
  0x4d   :  { %v459_v59 = vsel %vm457_vm15, %v458_v22, %v456_v28  ;;  %v2123_v63 = vmul.f32 %v1933_v48, %v960_v11  ;;  %v1104_v39 = vmax.f32 %v1103_v51, %v2104_v6  ;;  %1625 = vrsqrt.f32 %v2086_v26 }
  0x4e   :  { %v2127_v40 = vand.u32 2147483647, %v48_v53  ;;  %v963_v41 = vadd.f32 1.0, %v459_v59  ;;  %v2130_v2 = vmul.f32 %v1954_v55, %v961_v31  ;;  %1627 = vrsqrt.f32 %v2111_v13 }
  0x4f   :  { %v1105_v3 = vmax.f32 %v1104_v39, %v2107_v33  ;;  %v2134_v22 = vand.u32 2147483647, %v49_v0  ;;  %1629 = vrsqrt.f32 %v2116_v36  ;;  %v2138_v12 = vmul.f32 %v1965_v37, %v962_v60 }
  0x50   :  { %v2141_v62 = vand.u32 2147483647, %v50_v61  ;;  %1631 = vrsqrt.f32 %v2118_v58  ;;  %v2146_v45 = vmul.f32 %v1978_v4, %v963_v41  ;;  %v2149_v42 = vand.u32 2147483647, %v51_v21 }
  0x51   :  { %v1106_v16 = vmax.f32 %v1105_v3, %v2123_v63  ;;  %1633 = vrsqrt.f32 %v2127_v40  ;;  %vm179_vm0 = vcmp.eq.f32.partialorder %v2086_v26, inf  ;;  %vm181_vm1 = vcmp.eq.f32.partialorder %v2086_v26, 0.0 }
  0x52   :  { %1635 = vrsqrt.f32 %v2134_v22  ;;  %v182_v5 = vand.u32 2147483648, %v2086_v26  ;;  %vm191_vm2 = vcmp.eq.f32.partialorder %v2111_v13, inf  ;;  %v194_v35 = vand.u32 2147483648, %v2111_v13 }
  0x53   :  { %v1626_v27 = vpop.eup %1625  ;;  %v1107_v32 = vmax.f32 %v1106_v16, %v2130_v2  ;;  %1637 = vrsqrt.f32 %v2141_v62  ;;  %vm193_vm3 = vcmp.eq.f32.partialorder %v2111_v13, 0.0  ;;  %vm203_vm4 = vcmp.eq.f32.partialorder %v2116_v36, inf }
  0x54   :  { %v173_v24 = vmul.f32 %v1626_v27, %v2086_v26  ;;  %v1628_v30 = vpop.eup %1627  ;;  %1639 = vrsqrt.f32 %v2149_v42  ;;  %v206_v43 = vand.u32 2147483648, %v2116_v36  ;;  %vm205_vm5 = vcmp.eq.f32.partialorder %v2116_v36, 0.0 }
  0x55   :  { %v1108_v8 = vmax.f32 %v1107_v32, %v2138_v12  ;;  %v1630_v10 = vpop.eup %1629  ;;  %v185_v34 = vmul.f32 %v1628_v30, %v2111_v13  ;;  %vm215_vm6 = vcmp.eq.f32.partialorder %v2118_v58, inf  ;;  %v218_v31 = vand.u32 2147483648, %v2118_v58 }
  0x56   :  { %v174_v54 = vmul.f32 %v1626_v27, %v173_v24  ;;  %v1632_v18 = vpop.eup %1631  ;;  %v197_v7 = vmul.f32 %v1630_v10, %v2116_v36  ;;  %v230_v53 = vand.u32 2147483648, %v2127_v40  ;;  %vm217_vm7 = vcmp.eq.f32.partialorder %v2118_v58, 0.0 }
  0x57   :  { %v1109_v46 = vmax.f32 %v1108_v8, %v2146_v45  ;;  %v1634_v19 = vpop.eup %1633  ;;  %v186_v9 = vmul.f32 %v1628_v30, %v185_v34  ;;  %v209_v25 = vmul.f32 %v1632_v18, %v2118_v58  ;;  %vm227_vm8 = vcmp.eq.f32.partialorder %v2127_v40, inf }
  0x58   :  { %v175_v11 = vmul.f32 0.5, %v174_v54  ;;  %v198_v14 = vmul.f32 %v1630_v10, %v197_v7  ;;  %v221_v51 = vmul.f32 %v1634_v19, %v2127_v40  ;;  %v1636_v28 = vpop.eup %1635  ;;  %vm229_vm9 = vcmp.eq.f32.partialorder %v2127_v40, 0.0 }
  0x59   :  { %1110 = vmax.xlane.f32.xlu1 %v1109_v46  ;;  %v187_v59 = vmul.f32 0.5, %v186_v9  ;;  %v210_v39 = vmul.f32 %v1632_v18, %v209_v25  ;;  %v1638_v61 = vpop.eup %1637  ;;  %v233_v21 = vmul.f32 %v1636_v28, %v2134_v22  ;;  %v254_v16 = vand.u32 2147483648, %v2141_v62 }
  0x5a   :  { %v176_v60 = vsub.f32 1.5, %v175_v11  ;;  %v199_v41 = vmul.f32 0.5, %v198_v14  ;;  %v222_v3 = vmul.f32 %v1634_v19, %v221_v51  ;;  %vm239_vm10 = vcmp.eq.f32.partialorder %v2134_v22, inf  ;;  %v1640_v34 = vpop.eup %1639 }
  0x5b   :  { %v188_v24 = vsub.f32 1.5, %v187_v59  ;;  %v211_v8 = vmul.f32 0.5, %v210_v39  ;;  %v245_v54 = vmul.f32 %v1638_v61, %v2141_v62  ;;  %v234_v11 = vmul.f32 %v1636_v28, %v233_v21 }
  0x5c   :  { %v177_v32 = vmul.f32 %v1626_v27, %v176_v60  ;;  %v200_v46 = vsub.f32 1.5, %v199_v41  ;;  %v223_v7 = vmul.f32 0.5, %v222_v3  ;;  %vm241_vm11 = vcmp.eq.f32.partialorder %v2134_v22, 0.0 }
  0x5d   :  { %vm251_vm12 = vcmp.eq.f32.partialorder %v2141_v62, inf  ;;  %v189_v14 = vmul.f32 %v1628_v30, %v188_v24  ;;  %v212_v27 = vsub.f32 1.5, %v211_v8  ;;  %v246_v51 = vmul.f32 %v1638_v61, %v245_v54 }
  0x5e   :  { %v178_v25 = vmul.f32 %v177_v32, %v2086_v26  ;;  %vm253_vm13 = vcmp.eq.f32.partialorder %v2141_v62, 0.0  ;;  %v201_v60 = vmul.f32 %v1630_v10, %v200_v46  ;;  %v224_v59 = vsub.f32 1.5, %v223_v7 }
  0x5f   :  { %v235_v39 = vmul.f32 0.5, %v234_v11  ;;  %v257_v41 = vmul.f32 %v1640_v34, %v2149_v42  ;;  %v190_v21 = vmul.f32 %v189_v14, %v2111_v13  ;;  %v213_v0 = vmul.f32 %v1632_v18, %v212_v27  ;;  %v84_v14 = vld [vmem:[#allocation2 + $0x140] sm:$0xff] }
  0x60   :  { %v180_v3 = vsel %vm179_vm0, %v2086_v26, %v178_v25  ;;  %v247_v9 = vmul.f32 0.5, %v246_v51  ;;  %v202_v32 = vmul.f32 %v201_v60, %v2116_v36  ;;  %v225_v24 = vmul.f32 %v1634_v19, %v224_v59  ;;  %v85_v59 = vld [vmem:[#allocation2 + $0x148] sm:$0xff] }
  0x61   :  { %v183_v30 = vsel %vm181_vm1, %v182_v5, %v180_v3  ;;  %v236_v8 = vsub.f32 1.5, %v235_v39  ;;  %vm263_vm14 = vcmp.eq.f32.partialorder %v2149_v42, inf  ;;  %v192_v10 = vsel %vm191_vm2, %v2111_v13, %v190_v21 }
  0x62   :  { %v214_v54 = vmul.f32 %v213_v0, %v2118_v58  ;;  %v248_v46 = vsub.f32 1.5, %v247_v9  ;;  %v258_v7 = vmul.f32 %v1640_v34, %v257_v41  ;;  %v195_v26 = vsel %vm193_vm3, %v194_v35, %v192_v10  ;;  %v87_v10 = vld [vmem:[#allocation2 + $0x158] sm:$0xff] }
  0x63   :  { %v204_v5 = vsel %vm203_vm4, %v2116_v36, %v202_v32  ;;  %v226_v18 = vmul.f32 %v225_v24, %v2127_v40  ;;  %v237_v19 = vmul.f32 %v1636_v28, %v236_v8  ;;  %v940_v28 = vadd.f32 1.0, %v183_v30 }
  0x64   :  { %v207_v11 = vsel %vm205_vm5, %v206_v43, %v204_v5  ;;  %v216_v0 = vsel %vm215_vm6, %v2118_v58, %v214_v54  ;;  %v249_v9 = vmul.f32 %v1638_v61, %v248_v46  ;;  %v259_v25 = vmul.f32 0.5, %v258_v7 }
  0x65   :  { %v219_v13 = vsel %vm217_vm7, %v218_v31, %v216_v0  ;;  %v228_v35 = vsel %vm227_vm8, %v2127_v40, %v226_v18  ;;  %v238_v27 = vmul.f32 %v237_v19, %v2134_v22  ;;  %v941_v60 = vadd.f32 1.0, %v195_v26  ;;  %v89_v18 = vld [vmem:[#allocation2 + $0x168] sm:$0xff] }
  0x66   :  { %v231_v36 = vsel %vm229_vm9, %v230_v53, %v228_v35  ;;  %v250_v43 = vmul.f32 %v249_v9, %v2141_v62  ;;  %v260_v51 = vsub.f32 1.5, %v259_v25  ;;  %v942_v58 = vadd.f32 1.0, %v207_v11 }
  0x67   :  { %v240_v61 = vsel %vm239_vm10, %v2134_v22, %v238_v27  ;;  %v943_v31 = vadd.f32 1.0, %v219_v13  ;;  %v2224_v39 = vand.u32 2147483647, %v84_v14  ;;  %v3484_v41 = vand.u32 2147483648, %v2134_v22  ;;  %v86_v22 = vld [vmem:[#allocation2 + $0x150] sm:$0xff] }
  0x68   :  { %v252_v40 = vsel %vm251_vm12, %v2141_v62, %v250_v43  ;;  %v261_v53 = vmul.f32 %v1640_v34, %v260_v51  ;;  %v2234_v21 = vmul.f32 %v1841_v20, %v940_v28  ;;  %v944_v32 = vadd.f32 1.0, %v231_v36  ;;  %v90_v13 = vld [vmem:[#allocation2 + $0x170] sm:$0xff] }
  0x69   :  { %v243_v3 = vsel %vm241_vm11, %v3484_v41, %v240_v61  ;;  %v255_v30 = vsel %vm253_vm13, %v254_v16, %v252_v40  ;;  %v2239_v24 = vmul.f32 %v1847_v23, %v941_v60  ;;  %v2242_v8 = vmul.f32 %v1870_v47, %v942_v58  ;;  %v88_v16 = vld [vmem:[#allocation2 + $0x160] sm:$0xff] }
  0x6a   :  { %v262_v54 = vmul.f32 %v261_v53, %v2149_v42  ;;  %vm265_vm15 = vcmp.eq.f32.partialorder %v2149_v42, 0.0  ;;  %v2246_v34 = vand.u32 2147483647, %v85_v59  ;;  %v945_v46 = vadd.f32 1.0, %v243_v3 }
  0x6b   :  { %v2249_v7 = vmul.f32 %v1877_v56, %v943_v31  ;;  %v1085_v62 = vmax.f32 %v2234_v21, %v2239_v24  ;;  %v946_v5 = vadd.f32 1.0, %v255_v30  ;;  %v2256_v19 = vand.u32 2147483647, %v86_v22 }
  0x6c   :  { %v264_v26 = vsel %vm263_vm14, %v2149_v42, %v262_v54  ;;  %v2258_v11 = vand.u32 2147483647, %v87_v10  ;;  %v3485_v0 = vand.u32 2147483648, %v2149_v42  ;;  %v2263_v25 = vmul.f32 %v1933_v48, %v944_v32  ;;  %v91_v42 = vld [vmem:[#allocation2 + $0x178] sm:$0xff] }
  0x6d   :  { %v1086_v14 = vmax.f32 %v1085_v62, %v2242_v8  ;;  %1641 = vrsqrt.f32 %v2224_v39  ;;  %v2267_v35 = vand.u32 2147483647, %v88_v16  ;;  %v2271_v28 = vmul.f32 %v1954_v55, %v945_v46 }
  0x6e   :  { %v267_v9 = vsel %vm265_vm15, %v3485_v0, %v264_v26  ;;  %1643 = vrsqrt.f32 %v2246_v34  ;;  %v2274_v43 = vand.u32 2147483647, %v89_v18  ;;  %v2278_v51 = vmul.f32 %v1965_v37, %v946_v5 }
  0x6f   :  { %v947_v27 = vadd.f32 1.0, %v267_v9  ;;  %v1087_v36 = vmax.f32 %v1086_v14, %v2249_v7  ;;  %1645 = vrsqrt.f32 %v2256_v19  ;;  %v2281_v61 = vand.u32 2147483647, %v90_v13 }
  0x70   :  { %1647 = vrsqrt.f32 %v2258_v11  ;;  %v2284_v58 = vand.u32 2147483647, %v91_v42  ;;  %vm659_vm0 = vcmp.eq.f32.partialorder %v2224_v39, inf  ;;  %vm661_vm1 = vcmp.eq.f32.partialorder %v2224_v39, 0.0 }
  0x71   :  { %v1088_v60 = vmax.f32 %v1087_v36, %v2263_v25  ;;  %1649 = vrsqrt.f32 %v2267_v35  ;;  %v2288_v59 = vmul.f32 %v1978_v4, %v947_v27  ;;  %vm671_vm2 = vcmp.eq.f32.partialorder %v2246_v34, inf }
  0x72   :  { %1651 = vrsqrt.f32 %v2274_v43  ;;  %vm673_vm3 = vcmp.eq.f32.partialorder %v2246_v34, 0.0  ;;  %vm683_vm4 = vcmp.eq.f32.partialorder %v2256_v19, inf  ;;  %vm685_vm5 = vcmp.eq.f32.partialorder %v2256_v19, 0.0 }
  0x73   :  { %v1642_v31 = vpop.eup %1641  ;;  %v1089_v41 = vmax.f32 %v1088_v60, %v2271_v28  ;;  %1653 = vrsqrt.f32 %v2281_v61  ;;  %vm695_vm6 = vcmp.eq.f32.partialorder %v2258_v11, inf  ;;  %vm697_vm7 = vcmp.eq.f32.partialorder %v2258_v11, 0.0 }
  0x74   :  { %v1644_v3 = vpop.eup %1643  ;;  %v653_v40 = vmul.f32 %v1642_v31, %v2224_v39  ;;  %1655 = vrsqrt.f32 %v2284_v58  ;;  %vm707_vm8 = vcmp.eq.f32.partialorder %v2267_v35, inf  ;;  %vm709_vm9 = vcmp.eq.f32.partialorder %v2267_v35, 0.0 }
  0x75   :  { %v1090_v53 = vmax.f32 %v1089_v41, %v2278_v51  ;;  %v665_v32 = vmul.f32 %v1644_v3, %v2246_v34  ;;  %v1646_v22 = vpop.eup %1645  ;;  %vm719_vm10 = vcmp.eq.f32.partialorder %v2274_v43, inf  ;;  %vm721_vm11 = vcmp.eq.f32.partialorder %v2274_v43, 0.0 }
  0x76   :  { %v654_v10 = vmul.f32 %v1642_v31, %v653_v40  ;;  %v1648_v46 = vpop.eup %1647  ;;  %v677_v26 = vmul.f32 %v1646_v22, %v2256_v19  ;;  %vm731_vm12 = vcmp.eq.f32.partialorder %v2281_v61, inf  ;;  %vm733_vm13 = vcmp.eq.f32.partialorder %v2281_v61, 0.0 }
  0x77   :  { %v1091_v62 = vmax.f32 %v1090_v53, %v2288_v59  ;;  %v666_v16 = vmul.f32 %v1644_v3, %v665_v32  ;;  %v1650_v18 = vpop.eup %1649  ;;  %v689_v9 = vmul.f32 %v1648_v46, %v2258_v11  ;;  %vm743_vm14 = vcmp.eq.f32.partialorder %v2284_v58, inf }
  0x78   :  { %v655_v0 = vmul.f32 0.5, %v654_v10  ;;  %v1652_v27 = vpop.eup %1651  ;;  %v678_v42 = vmul.f32 %v1646_v22, %v677_v26  ;;  %v701_v60 = vmul.f32 %v1650_v18, %v2267_v35  ;;  %vm745_vm15 = vcmp.eq.f32.partialorder %v2284_v58, 0.0 }
  0x79   :  { %1092 = vmax.xlane.f32.xlu0 %v1091_v62  ;;  %v667_v36 = vmul.f32 0.5, %v666_v16  ;;  %v690_v53 = vmul.f32 %v1648_v46, %v689_v9  ;;  %v713_v32 = vmul.f32 %v1652_v27, %v2274_v43  ;;  %v1654_v62 = vpop.eup %1653 }
  0x7a   :  { %v656_v40 = vsub.f32 1.5, %v655_v0  ;;  %v679_v26 = vmul.f32 0.5, %v678_v42  ;;  %v702_v13 = vmul.f32 %v1650_v18, %v701_v60  ;;  %v1656_v0 = vpop.eup %1655  ;;  %v725_v54 = vmul.f32 %v1654_v62, %v2281_v61 }
  0x7b   :  { %v668_v16 = vsub.f32 1.5, %v667_v36  ;;  %v691_v14 = vmul.f32 0.5, %v690_v53  ;;  %v714_v5 = vmul.f32 %v1652_v27, %v713_v32  ;;  %v737_v36 = vmul.f32 %v1656_v0, %v2284_v58 }
  0x7c   :  { %v657_v9 = vmul.f32 %v1642_v31, %v656_v40  ;;  %v680_v10 = vsub.f32 1.5, %v679_v26  ;;  %v703_v29 = vmul.f32 0.5, %v702_v13  ;;  %v726_v41 = vmul.f32 %v1654_v62, %v725_v54 }
  0x7d   :  { %v669_v30 = vmul.f32 %v1644_v3, %v668_v16  ;;  %v692_v60 = vsub.f32 1.5, %v691_v14  ;;  %v715_v15 = vmul.f32 0.5, %v714_v5  ;;  %v738_v32 = vmul.f32 %v1656_v0, %v737_v36 }
  0x7e   :  { %v658_v42 = vmul.f32 %v657_v9, %v2224_v39  ;;  %v681_v40 = vmul.f32 %v1646_v22, %v680_v10  ;;  %v704_v53 = vsub.f32 1.5, %v703_v29  ;;  %v727_v26 = vmul.f32 0.5, %v726_v41 }
  0x7f   :  { %v670_v31 = vmul.f32 %v669_v30, %v2246_v34  ;;  %v693_v13 = vmul.f32 %v1648_v46, %v692_v60  ;;  %v716_v16 = vsub.f32 1.5, %v715_v15  ;;  %v3486_v14 = vand.u32 2147483648, %v2224_v39 }
  0x80   :  { %v660_v3 = vsel %vm659_vm0, %v2224_v39, %v658_v42  ;;  %v682_v29 = vmul.f32 %v681_v40, %v2256_v19  ;;  %v705_v22 = vmul.f32 %v1650_v18, %v704_v53  ;;  %v3487_v46 = vand.u32 2147483648, %v2246_v34  ;;  %v68_v40 = vld [vmem:[#allocation2 + $0xc0] sm:$0xff] }
  0x81   :  { %v663_v54 = vsel %vm661_vm1, %v3486_v14, %v660_v3  ;;  %v672_v30 = vsel %vm671_vm2, %v2246_v34, %v670_v31  ;;  %v694_v5 = vmul.f32 %v693_v13, %v2258_v11  ;;  %v717_v41 = vmul.f32 %v1652_v27, %v716_v16 }
  0x82   :  { %v675_v15 = vsel %vm673_vm3, %v3487_v46, %v672_v30  ;;  %v728_v10 = vsub.f32 1.5, %v727_v26  ;;  %v684_v39 = vsel %vm683_vm4, %v2256_v19, %v682_v29  ;;  %v706_v9 = vmul.f32 %v705_v22, %v2267_v35  ;;  %v69_v46 = vld [vmem:[#allocation2 + $0xc8] sm:$0xff] }
  0x83   :  { %v739_v36 = vmul.f32 0.5, %v738_v32  ;;  %v980_v42 = vadd.f32 1.0, %v663_v54  ;;  %v3488_v18 = vand.u32 2147483648, %v2256_v19  ;;  %v696_v34 = vsel %vm695_vm6, %v2258_v11, %v694_v5 }
  0x84   :  { %v718_v27 = vmul.f32 %v717_v41, %v2274_v43  ;;  %v729_v31 = vmul.f32 %v1654_v62, %v728_v10  ;;  %v3489_v53 = vand.u32 2147483648, %v2258_v11  ;;  %v708_v32 = vsel %vm707_vm8, %v2267_v35, %v706_v9 }
  0x85   :  { %v687_v60 = vsel %vm685_vm5, %v3488_v18, %v684_v39  ;;  %v740_v13 = vsub.f32 1.5, %v739_v36  ;;  %v981_v19 = vadd.f32 1.0, %v675_v15  ;;  %v3490_v16 = vand.u32 2147483648, %v2267_v35  ;;  %v70_v39 = vld [vmem:[#allocation2 + $0xd0] sm:$0xff] }
  0x86   :  { %v699_v3 = vsel %vm697_vm7, %v3489_v53, %v696_v34  ;;  %v720_v62 = vsel %vm719_vm10, %v2274_v43, %v718_v27  ;;  %v730_v14 = vmul.f32 %v729_v31, %v2281_v61  ;;  %v982_v54 = vadd.f32 1.0, %v687_v60  ;;  %v71_v34 = vld [vmem:[#allocation2 + $0xd8] sm:$0xff]  ;;  %v72_v31 = vld [vmem:[#allocation2 + $0xe0] sm:$0xff] }
  0x87   :  { %v711_v26 = vsel %vm709_vm9, %v3490_v16, %v708_v32  ;;  %v3491_v11 = vand.u32 2147483648, %v2274_v43  ;;  %v741_v29 = vmul.f32 %v1656_v0, %v740_v13  ;;  %v983_v22 = vadd.f32 1.0, %v699_v3  ;;  %v73_v16 = vld [vmem:[#allocation2 + $0xe8] sm:$0xff] }
  0x88   :  { %v2377_v15 = vand.u32 2147483647, %v68_v40  ;;  %v732_v35 = vsel %vm731_vm12, %v2281_v61, %v730_v14  ;;  %v984_v5 = vadd.f32 1.0, %v711_v26  ;;  %v2383_v41 = vmul.f32 %v1841_v20, %v980_v42 }
  0x89   :  { %v723_v30 = vsel %vm721_vm11, %v3491_v11, %v720_v62  ;;  %v2386_v10 = vmul.f32 %v1847_v23, %v981_v19  ;;  %v3494_v43 = vand.u32 2147483648, %v2281_v61  ;;  %v742_v9 = vmul.f32 %v741_v29, %v2284_v58  ;;  %v74_v11 = vld [vmem:[#allocation2 + $0xf0] sm:$0xff] }
  0x8a   :  { %3492 = vst [vmem:[#allocation16_spill] sm:$0xff] %v2383_v41  ;;  %v985_v36 = vadd.f32 1.0, %v723_v30  ;;  %v2394_v18 = vmul.f32 %v1870_v47, %v982_v54  ;;  %v2397_v60 = vmul.f32 %v1877_v56, %v983_v22  ;;  %v2401_v27 = vand.u32 2147483647, %v69_v46  ;;  %v75_v30 = vld [vmem:[#allocation2 + $0xf8] sm:$0xff] }
  0x8b   :  { %3493 = vst [vmem:[#allocation17_spill] sm:$0xff] %v2386_v10  ;;  %v735_v0 = vsel %vm733_vm13, %v3494_v43, %v732_v35  ;;  %v1130_v42 = vmax.f32 %v2383_v41, %v2386_v10  ;;  %v744_v61 = vsel %vm743_vm14, %v2284_v58, %v742_v9  ;;  %v2406_v40 = vand.u32 2147483647, %v70_v39 }
  0x8c   :  { %3495 = vst [vmem:[#allocation18_spill] sm:$0xff] %v2394_v18  ;;  %v3497_v53 = vand.u32 2147483648, %v2284_v58  ;;  %v986_v32 = vadd.f32 1.0, %v735_v0  ;;  %v2413_v13 = vmul.f32 %v1933_v48, %v984_v5  ;;  %v2417_v26 = vmul.f32 %v1954_v55, %v985_v36 }
  0x8d   :  { %3496 = vst [vmem:[#allocation19_spill] sm:$0xff] %v2397_v60  ;;  %v1131_v19 = vmax.f32 %v1130_v42, %v2394_v18  ;;  %v2419_v62 = vand.u32 2147483647, %v71_v34  ;;  %1657 = vrsqrt.f32 %v2377_v15  ;;  %v2423_v58 = vand.u32 2147483647, %v72_v31 }
  0x8e   :  { %v747_v3 = vsel %vm745_vm15, %v3497_v53, %v744_v61  ;;  %3498 = vst [vmem:[#allocation20_spill] sm:$0xff] %v2413_v13  ;;  %1659 = vrsqrt.f32 %v2401_v27  ;;  %v2426_v29 = vand.u32 2147483647, %v73_v16  ;;  %v2429_v22 = vmul.f32 %v1965_v37, %v986_v32 }
  0x8f   :  { %3499 = vst [vmem:[#allocation21_spill] sm:$0xff] %v2417_v26  ;;  %v987_v14 = vadd.f32 1.0, %v747_v3  ;;  %v1132_v54 = vmax.f32 %v1131_v19, %v2397_v60  ;;  %1661 = vrsqrt.f32 %v2406_v40  ;;  %v2433_v35 = vand.u32 2147483647, %v74_v11 }
  0x90   :  { %3500 = vst [vmem:[#allocation22_spill] sm:$0xff] %v2429_v22  ;;  %1663 = vrsqrt.f32 %v2419_v62  ;;  %v2440_v43 = vand.u32 2147483647, %v75_v30  ;;  %vm467_vm0 = vcmp.eq.f32.partialorder %v2377_v15, inf  ;;  %vm469_vm1 = vcmp.eq.f32.partialorder %v2377_v15, 0.0 }
  0x91   :  { %v1133_v46 = vmax.f32 %v1132_v54, %v2413_v13  ;;  %v2437_v5 = vmul.f32 %v1978_v4, %v987_v14  ;;  %1665 = vrsqrt.f32 %v2423_v58  ;;  %vm479_vm2 = vcmp.eq.f32.partialorder %v2401_v27, inf }
  0x92   :  { %1667 = vrsqrt.f32 %v2426_v29  ;;  %vm481_vm3 = vcmp.eq.f32.partialorder %v2401_v27, 0.0  ;;  %v482_v16 = vand.u32 2147483648, %v2401_v27  ;;  %vm491_vm4 = vcmp.eq.f32.partialorder %v2406_v40, inf }
  0x93   :  { %3501 = vst [vmem:[#allocation23_spill] sm:$0xff] %v2437_v5  ;;  %v1134_v39 = vmax.f32 %v1133_v46, %v2417_v26  ;;  %v1658_v0 = vpop.eup %1657  ;;  %1669 = vrsqrt.f32 %v2433_v35  ;;  %vm493_vm5 = vcmp.eq.f32.partialorder %v2406_v40, 0.0  ;;  %vm503_vm6 = vcmp.eq.f32.partialorder %v2419_v62, inf }
  0x94   :  { %v1660_v9 = vpop.eup %1659  ;;  %v461_v42 = vmul.f32 %v1658_v0, %v2377_v15  ;;  %1671 = vrsqrt.f32 %v2440_v43  ;;  %vm505_vm7 = vcmp.eq.f32.partialorder %v2419_v62, 0.0  ;;  %vm515_vm8 = vcmp.eq.f32.partialorder %v2423_v58, inf }
  0x95   :  { %v1135_v36 = vmax.f32 %v1134_v39, %v2429_v22  ;;  %v473_v61 = vmul.f32 %v1660_v9, %v2401_v27  ;;  %v1662_v31 = vpop.eup %1661  ;;  %vm517_vm9 = vcmp.eq.f32.partialorder %v2423_v58, 0.0  ;;  %vm527_vm10 = vcmp.eq.f32.partialorder %v2426_v29, inf }
  0x96   :  { %v462_v3 = vmul.f32 %v1658_v0, %v461_v42  ;;  %v1664_v32 = vpop.eup %1663  ;;  %v485_v14 = vmul.f32 %v1662_v31, %v2406_v40  ;;  %vm529_vm11 = vcmp.eq.f32.partialorder %v2426_v29, 0.0  ;;  %vm539_vm12 = vcmp.eq.f32.partialorder %v2433_v35, inf }
  0x97   :  { %v1136_v53 = vmax.f32 %v1135_v36, %v2437_v5  ;;  %v474_v19 = vmul.f32 %v1660_v9, %v473_v61  ;;  %v1666_v11 = vpop.eup %1665  ;;  %v497_v46 = vmul.f32 %v1664_v32, %v2419_v62  ;;  %vm541_vm13 = vcmp.eq.f32.partialorder %v2433_v35, 0.0 }
  0x98   :  { %v463_v30 = vmul.f32 0.5, %v462_v3  ;;  %v1668_v42 = vpop.eup %1667  ;;  %v486_v34 = vmul.f32 %v1662_v31, %v485_v14  ;;  %v509_v54 = vmul.f32 %v1666_v11, %v2423_v58  ;;  %vm551_vm14 = vcmp.eq.f32.partialorder %v2440_v43, inf }
  0x99   :  { %1137 = vmax.xlane.f32.xlu2 %v1136_v53  ;;  %v475_v61 = vmul.f32 0.5, %v474_v19  ;;  %v498_v17 = vmul.f32 %v1664_v32, %v497_v46  ;;  %v521_v39 = vmul.f32 %v1668_v42, %v2426_v29  ;;  %v1670_v19 = vpop.eup %1669  ;;  %vm553_vm15 = vcmp.eq.f32.partialorder %v2440_v43, 0.0 }
  0x9a   :  { %v464_v3 = vsub.f32 1.5, %v463_v30  ;;  %v487_v1 = vmul.f32 0.5, %v486_v34  ;;  %v510_v57 = vmul.f32 %v1666_v11, %v509_v54  ;;  %v1672_v30 = vpop.eup %1671  ;;  %v533_v49 = vmul.f32 %v1670_v19, %v2433_v35 }
  0x9b   :  { %v476_v14 = vsub.f32 1.5, %v475_v61  ;;  %v499_v52 = vmul.f32 0.5, %v498_v17  ;;  %v522_v50 = vmul.f32 %v1668_v42, %v521_v39  ;;  %v545_v34 = vmul.f32 %v1672_v30, %v2440_v43 }
  0x9c   :  { %v465_v46 = vmul.f32 %v1658_v0, %v464_v3  ;;  %v488_v36 = vsub.f32 1.5, %v487_v1  ;;  %v511_v22 = vmul.f32 0.5, %v510_v57  ;;  %v534_v53 = vmul.f32 %v1670_v19, %v533_v49 }
  0x9d   :  { %v477_v5 = vmul.f32 %v1660_v9, %v476_v14  ;;  %v500_v61 = vsub.f32 1.5, %v499_v52  ;;  %v523_v26 = vmul.f32 0.5, %v522_v50  ;;  %v546_v3 = vmul.f32 %v1672_v30, %v545_v34 }
  0x9e   :  { %v466_v54 = vmul.f32 %v465_v46, %v2377_v15  ;;  %v489_v0 = vmul.f32 %v1662_v31, %v488_v36  ;;  %v512_v39 = vsub.f32 1.5, %v511_v22  ;;  %v535_v14 = vmul.f32 0.5, %v534_v53 }
  0x9f   :  { %v478_v17 = vmul.f32 %v477_v5, %v2401_v27  ;;  %v501_v1 = vmul.f32 %v1664_v32, %v500_v61  ;;  %v524_v9 = vsub.f32 1.5, %v523_v26  ;;  %v3502_v52 = vand.u32 2147483648, %v2377_v15  ;;  %v52_v61 = vld [vmem:[#allocation2 + $0x40] sm:$0xff] }
  0xa0   :  { %v468_v57 = vsel %vm467_vm0, %v2377_v15, %v466_v54  ;;  %v490_v22 = vmul.f32 %v489_v0, %v2406_v40  ;;  %v513_v5 = vmul.f32 %v1666_v11, %v512_v39  ;;  %v536_v36 = vsub.f32 1.5, %v535_v14 }
  0xa1   :  { %v471_v49 = vsel %vm469_vm1, %v3502_v52, %v468_v57  ;;  %v480_v50 = vsel %vm479_vm2, %v2401_v27, %v478_v17  ;;  %v502_v31 = vmul.f32 %v501_v1, %v2419_v62  ;;  %v525_v32 = vmul.f32 %v1668_v42, %v524_v9 }
  0xa2   :  { %v483_v26 = vsel %vm481_vm3, %v482_v16, %v480_v50  ;;  %v492_v15 = vsel %vm491_vm4, %v2406_v40, %v490_v22  ;;  %v514_v53 = vmul.f32 %v513_v5, %v2423_v58  ;;  %v547_v46 = vmul.f32 0.5, %v546_v3  ;;  %v53_v22 = vld [vmem:[#allocation2 + $0x48] sm:$0xff] }
  0xa3   :  { %v964_v34 = vadd.f32 1.0, %v471_v49  ;;  %v3503_v54 = vand.u32 2147483648, %v2406_v40  ;;  %v504_v27 = vsel %vm503_vm6, %v2419_v62, %v502_v31  ;;  %v526_v16 = vmul.f32 %v525_v32, %v2426_v29 }
  0xa4   :  { %v537_v42 = vmul.f32 %v1670_v19, %v536_v36  ;;  %v3504_v17 = vand.u32 2147483648, %v2419_v62  ;;  %v516_v39 = vsel %vm515_vm8, %v2423_v58, %v514_v53  ;;  %v548_v3 = vsub.f32 1.5, %v547_v46  ;;  %v54_v36 = vld [vmem:[#allocation2 + $0x50] sm:$0xff] }
  0xa5   :  { %v495_v11 = vsel %vm493_vm5, %v3503_v54, %v492_v15  ;;  %v965_v40 = vadd.f32 1.0, %v483_v26  ;;  %v3505_v57 = vand.u32 2147483648, %v2423_v58  ;;  %v528_v19 = vsel %vm527_vm10, %v2426_v29, %v526_v16  ;;  %v56_v16 = vld [vmem:[#allocation2 + $0x60] sm:$0xff] }
  0xa6   :  { %v507_v0 = vsel %vm505_vm7, %v3504_v17, %v504_v27  ;;  %v538_v9 = vmul.f32 %v537_v42, %v2433_v35  ;;  %v966_v14 = vadd.f32 1.0, %v495_v11  ;;  %v3506_v62 = vand.u32 2147483648, %v2426_v29  ;;  %v55_v11 = vld [vmem:[#allocation2 + $0x58] sm:$0xff] }
  0xa7   :  { %v519_v1 = vsel %vm517_vm9, %v3505_v57, %v516_v39  ;;  %v549_v49 = vmul.f32 %v1672_v30, %v548_v3  ;;  %v967_v50 = vadd.f32 1.0, %v507_v0  ;;  %v2527_v5 = vand.u32 2147483647, %v52_v61 }
  0xa8   :  { %v531_v52 = vsel %vm529_vm11, %v3506_v62, %v528_v19  ;;  %v540_v58 = vsel %vm539_vm12, %v2433_v35, %v538_v9  ;;  %v968_v26 = vadd.f32 1.0, %v519_v1  ;;  %v2533_v31 = vmul.f32 %v1841_v20, %v964_v34  ;;  %v58_v1 = vld [vmem:[#allocation2 + $0x70] sm:$0xff]  ;;  %v59_v62 = vld [vmem:[#allocation2 + $0x78] sm:$0xff] }
  0xa9   :  { %v2536_v32 = vmul.f32 %v1847_v23, %v965_v40  ;;  %v3509_v29 = vand.u32 2147483648, %v2433_v35  ;;  %v550_v15 = vmul.f32 %v549_v49, %v2440_v43  ;;  %v969_v53 = vadd.f32 1.0, %v531_v52  ;;  %v57_v40 = vld [vmem:[#allocation2 + $0x68] sm:$0xff] }
  0xaa   :  { %3507 = vst [vmem:[#allocation24_spill] sm:$0xff] %v2533_v31  ;;  %v2544_v46 = vmul.f32 %v1870_v47, %v966_v14  ;;  %v2547_v54 = vmul.f32 %v1877_v56, %v967_v50  ;;  %v2551_v27 = vand.u32 2147483647, %v53_v22  ;;  %v2556_v42 = vand.u32 2147483647, %v54_v36 }
  0xab   :  { %3508 = vst [vmem:[#allocation25_spill] sm:$0xff] %v2536_v32  ;;  %v543_v30 = vsel %vm541_vm13, %v3509_v29, %v540_v58  ;;  %v1112_v34 = vmax.f32 %v2533_v31, %v2536_v32  ;;  %v552_v35 = vsel %vm551_vm14, %v2440_v43, %v550_v15  ;;  %v3512_v61 = vand.u32 2147483648, %v2440_v43 }
  0xac   :  { %3510 = vst [vmem:[#allocation26_spill] sm:$0xff] %v2544_v46  ;;  %v970_v0 = vadd.f32 1.0, %v543_v30  ;;  %v2563_v39 = vmul.f32 %v1933_v48, %v968_v26  ;;  %v2567_v57 = vmul.f32 %v1954_v55, %v969_v53  ;;  %v2569_v19 = vand.u32 2147483647, %v55_v11 }
  0xad   :  { %3511 = vst [vmem:[#allocation27_spill] sm:$0xff] %v2547_v54  ;;  %v555_v17 = vsel %vm553_vm15, %v3512_v61, %v552_v35  ;;  %v1113_v3 = vmax.f32 %v1112_v34, %v2544_v46  ;;  %1673 = vrsqrt.f32 %v2527_v5  ;;  %v2573_v43 = vand.u32 2147483647, %v56_v16 }
  0xae   :  { %3513 = vst [vmem:[#allocation28_spill] sm:$0xff] %v2563_v39  ;;  %v971_v9 = vadd.f32 1.0, %v555_v17  ;;  %1675 = vrsqrt.f32 %v2551_v27  ;;  %v2576_v52 = vand.u32 2147483647, %v57_v40  ;;  %v2580_v49 = vmul.f32 %v1965_v37, %v970_v0 }
  0xaf   :  { %3514 = vst [vmem:[#allocation29_spill] sm:$0xff] %v2567_v57  ;;  %v1114_v14 = vmax.f32 %v1113_v3, %v2547_v54  ;;  %1677 = vrsqrt.f32 %v2556_v42  ;;  %v2583_v22 = vand.u32 2147483647, %v58_v1  ;;  %v2590_v36 = vand.u32 2147483647, %v59_v62 }
  0xb0   :  { %3515 = vst [vmem:[#allocation30_spill] sm:$0xff] %v2580_v49  ;;  %1679 = vrsqrt.f32 %v2569_v19  ;;  %v2587_v58 = vmul.f32 %v1978_v4, %v971_v9  ;;  %vm275_vm0 = vcmp.eq.f32.partialorder %v2527_v5, inf  ;;  %vm277_vm1 = vcmp.eq.f32.partialorder %v2527_v5, 0.0 }
  0xb1   :  { %v1115_v50 = vmax.f32 %v1114_v14, %v2563_v39  ;;  %1681 = vrsqrt.f32 %v2573_v43  ;;  %vm287_vm2 = vcmp.eq.f32.partialorder %v2551_v27, inf  ;;  %vm289_vm3 = vcmp.eq.f32.partialorder %v2551_v27, 0.0 }
  0xb2   :  { %3516 = vst [vmem:[#allocation31_spill] sm:$0xff] %v2587_v58  ;;  %1683 = vrsqrt.f32 %v2576_v52  ;;  %vm299_vm4 = vcmp.eq.f32.partialorder %v2556_v42, inf  ;;  %v302_v1 = vand.u32 2147483648, %v2556_v42  ;;  %vm301_vm5 = vcmp.eq.f32.partialorder %v2556_v42, 0.0 }
  0xb3   :  { %v1116_v26 = vmax.f32 %v1115_v50, %v2567_v57  ;;  %v1674_v29 = vpop.eup %1673  ;;  %1685 = vrsqrt.f32 %v2583_v22  ;;  %vm311_vm6 = vcmp.eq.f32.partialorder %v2569_v19, inf  ;;  %vm313_vm7 = vcmp.eq.f32.partialorder %v2569_v19, 0.0 }
  0xb4   :  { %v1676_v30 = vpop.eup %1675  ;;  %v269_v53 = vmul.f32 %v1674_v29, %v2527_v5  ;;  %1687 = vrsqrt.f32 %v2590_v36  ;;  %vm323_vm8 = vcmp.eq.f32.partialorder %v2573_v43, inf  ;;  %vm325_vm9 = vcmp.eq.f32.partialorder %v2573_v43, 0.0 }
  0xb5   :  { %v1117_v15 = vmax.f32 %v1116_v26, %v2580_v49  ;;  %v1678_v34 = vpop.eup %1677  ;;  %v281_v35 = vmul.f32 %v1676_v30, %v2551_v27  ;;  %vm335_vm10 = vcmp.eq.f32.partialorder %v2576_v52, inf  ;;  %vm337_vm11 = vcmp.eq.f32.partialorder %v2576_v52, 0.0 }
  0xb6   :  { %v270_v17 = vmul.f32 %v1674_v29, %v269_v53  ;;  %v293_v0 = vmul.f32 %v1678_v34, %v2556_v42  ;;  %v1680_v3 = vpop.eup %1679  ;;  %vm347_vm12 = vcmp.eq.f32.partialorder %v2583_v22, inf  ;;  %vm349_vm13 = vcmp.eq.f32.partialorder %v2583_v22, 0.0 }
  0xb7   :  { %v1118_v61 = vmax.f32 %v1117_v15, %v2587_v58  ;;  %v282_v40 = vmul.f32 %v1676_v30, %v281_v35  ;;  %v1682_v14 = vpop.eup %1681  ;;  %v305_v26 = vmul.f32 %v1680_v3, %v2569_v19  ;;  %vm359_vm14 = vcmp.eq.f32.partialorder %v2590_v36, inf }
  0xb8   :  { %v271_v62 = vmul.f32 0.5, %v270_v17  ;;  %v294_v50 = vmul.f32 %v1678_v34, %v293_v0  ;;  %v1684_v53 = vpop.eup %1683  ;;  %v317_v16 = vmul.f32 %v1682_v14, %v2573_v43  ;;  %vm361_vm15 = vcmp.eq.f32.partialorder %v2590_v36, 0.0 }
  0xb9   :  { %1119 = vmax.xlane.f32.xlu1 %v1118_v61  ;;  %v283_v35 = vmul.f32 0.5, %v282_v40  ;;  %v1686_v58 = vpop.eup %1685  ;;  %v306_v0 = vmul.f32 %v1680_v3, %v305_v26  ;;  %v329_v15 = vmul.f32 %v1684_v53, %v2576_v52 }
  0xba   :  { %v272_v61 = vsub.f32 1.5, %v271_v62  ;;  %v295_v17 = vmul.f32 0.5, %v294_v50  ;;  %v318_v40 = vmul.f32 %v1682_v14, %v317_v16  ;;  %v341_v11 = vmul.f32 %v1686_v58, %v2583_v22  ;;  %v1688_v57 = vpop.eup %1687 }
  0xbb   :  { %v284_v49 = vsub.f32 1.5, %v283_v35  ;;  %v307_v26 = vmul.f32 0.5, %v306_v0  ;;  %v330_v39 = vmul.f32 %v1684_v53, %v329_v15  ;;  %v353_v46 = vmul.f32 %v1688_v57, %v2590_v36 }
  0xbc   :  { %v273_v62 = vmul.f32 %v1674_v29, %v272_v61  ;;  %v296_v50 = vsub.f32 1.5, %v295_v17  ;;  %v319_v35 = vmul.f32 0.5, %v318_v40  ;;  %v342_v16 = vmul.f32 %v1686_v58, %v341_v11 }
  0xbd   :  { %v285_v54 = vmul.f32 %v1676_v30, %v284_v49  ;;  %v308_v9 = vsub.f32 1.5, %v307_v26  ;;  %v331_v13 = vmul.f32 0.5, %v330_v39  ;;  %v354_v17 = vmul.f32 %v1688_v57, %v353_v46 }
  0xbe   :  { %v274_v32 = vmul.f32 %v273_v62, %v2527_v5  ;;  %v297_v31 = vmul.f32 %v1678_v34, %v296_v50  ;;  %v320_v61 = vsub.f32 1.5, %v319_v35  ;;  %v343_v15 = vmul.f32 0.5, %v342_v16 }
  0xbf   :  { %v286_v29 = vmul.f32 %v285_v54, %v2551_v27  ;;  %v309_v11 = vmul.f32 %v1680_v3, %v308_v9  ;;  %v332_v0 = vsub.f32 1.5, %v331_v13  ;;  %v3517_v40 = vand.u32 2147483648, %v2527_v5 }
  0xc0   :  { %v276_v49 = vsel %vm275_vm0, %v2527_v5, %v274_v32  ;;  %v298_v30 = vmul.f32 %v297_v31, %v2556_v42  ;;  %v321_v46 = vmul.f32 %v1682_v14, %v320_v61  ;;  %v344_v34 = vsub.f32 1.5, %v343_v15 }
  0xc1   :  { %v279_v39 = vsel %vm277_vm1, %v3517_v40, %v276_v49  ;;  %v288_v54 = vsel %vm287_vm2, %v2551_v27, %v286_v29  ;;  %v3518_v62 = vand.u32 2147483648, %v2551_v27  ;;  %v310_v32 = vmul.f32 %v309_v11, %v2569_v19  ;;  %v100_v29 = vld [vmem:[#allocation2 + $0x1c0] sm:$0xff] }
  0xc2   :  { %v300_v13 = vsel %vm299_vm4, %v2556_v42, %v298_v30  ;;  %v333_v3 = vmul.f32 %v1684_v53, %v332_v0  ;;  %v322_v9 = vmul.f32 %v321_v46, %v2573_v43  ;;  %v345_v50 = vmul.f32 %v1686_v58, %v344_v34 }
  0xc3   :  { %v291_v31 = vsel %vm289_vm3, %v3518_v62, %v288_v54  ;;  %v303_v5 = vsel %vm301_vm5, %v302_v1, %v300_v13  ;;  %v355_v14 = vmul.f32 0.5, %v354_v17  ;;  %v312_v26 = vsel %vm311_vm6, %v2569_v19, %v310_v32  ;;  %v101_v54 = vld [vmem:[#allocation2 + $0x1c8] sm:$0xff]  ;;  %v102_v13 = vld [vmem:[#allocation2 + $0x1d0] sm:$0xff]  ;;  %v103_v32 = vld [vmem:[#allocation2 + $0x1d8] sm:$0xff] }
  0xc4   :  { %v334_v27 = vmul.f32 %v333_v3, %v2576_v52  ;;  %v948_v35 = vadd.f32 1.0, %v279_v39  ;;  %v949_v16 = vadd.f32 1.0, %v291_v31  ;;  %v3519_v61 = vand.u32 2147483648, %v2569_v19 }
  0xc5   :  { %v324_v42 = vsel %vm323_vm8, %v2573_v43, %v322_v9  ;;  %v346_v58 = vmul.f32 %v345_v50, %v2583_v22  ;;  %v356_v1 = vsub.f32 1.5, %v355_v14  ;;  %v3520_v15 = vand.u32 2147483648, %v2573_v43  ;;  %v104_v50 = vld [vmem:[#allocation2 + $0x1e0] sm:$0xff] }
  0xc6   :  { %v315_v53 = vsel %vm313_vm7, %v3519_v61, %v312_v26  ;;  %v336_v49 = vsel %vm335_vm10, %v2576_v52, %v334_v27  ;;  %v950_v30 = vadd.f32 1.0, %v303_v5  ;;  %v3521_v19 = vand.u32 2147483648, %v2576_v52 }
  0xc7   :  { %v327_v17 = vsel %vm325_vm9, %v3520_v15, %v324_v42  ;;  %v951_v11 = vadd.f32 1.0, %v315_v53  ;;  %v348_v40 = vsel %vm347_vm12, %v2583_v22, %v346_v58  ;;  %v357_v39 = vmul.f32 %v1688_v57, %v356_v1  ;;  %v105_v58 = vld [vmem:[#allocation2 + $0x1e8] sm:$0xff]  ;;  %v106_v1 = vld [vmem:[#allocation2 + $0x1f0] sm:$0xff] }
  0xc8   :  { %v339_v0 = vsel %vm337_vm11, %v3521_v19, %v336_v49  ;;  %v2679_v46 = vand.u32 2147483647, %v100_v29  ;;  %v3522_v43 = vand.u32 2147483648, %v2583_v22  ;;  %v952_v62 = vadd.f32 1.0, %v327_v17 }
  0xc9   :  { %v2686_v31 = vmul.f32 %v1841_v20, %v948_v35  ;;  %v2689_v52 = vmul.f32 %v1847_v23, %v949_v16  ;;  %v358_v3 = vmul.f32 %v357_v39, %v2590_v36  ;;  %v2694_v57 = vmul.f32 %v1870_v47, %v950_v30 }
  0xca   :  { %v351_v34 = vsel %vm349_vm13, %v3522_v43, %v348_v40  ;;  %v953_v5 = vadd.f32 1.0, %v339_v0  ;;  %v2697_v22 = vmul.f32 %v1877_v56, %v951_v11  ;;  %v2701_v14 = vand.u32 2147483647, %v101_v54 }
  0xcb   :  { %3523 = vst [vmem:[#allocation32_spill] sm:$0xff] %v2686_v31  ;;  %v1094_v9 = vmax.f32 %v2686_v31, %v2689_v52  ;;  %v360_v26 = vsel %vm359_vm14, %v2590_v36, %v358_v3  ;;  %v954_v27 = vadd.f32 1.0, %v351_v34  ;;  %v2706_v35 = vand.u32 2147483647, %v102_v13 }
  0xcc   :  { %3524 = vst [vmem:[#allocation33_spill] sm:$0xff] %v2689_v52  ;;  %v2708_v16 = vand.u32 2147483647, %v103_v32  ;;  %v3527_v29 = vand.u32 2147483648, %v2590_v36  ;;  %v2713_v53 = vmul.f32 %v1933_v48, %v952_v62  ;;  %1689 = vrsqrt.f32 %v2679_v46  ;;  %v107_v36 = vld [vmem:[#allocation2 + $0x1f8] sm:$0xff] }
  0xcd   :  { %3525 = vst [vmem:[#allocation34_spill] sm:$0xff] %v2694_v57  ;;  %v1095_v42 = vmax.f32 %v1094_v9, %v2694_v57  ;;  %v2717_v15 = vand.u32 2147483647, %v104_v50  ;;  %v2720_v49 = vmul.f32 %v1954_v55, %v953_v5  ;;  %1691 = vrsqrt.f32 %v2701_v14 }
  0xce   :  { %3526 = vst [vmem:[#allocation35_spill] sm:$0xff] %v2697_v22  ;;  %v363_v61 = vsel %vm361_vm15, %v3527_v29, %v360_v26  ;;  %v2724_v11 = vand.u32 2147483647, %v105_v58  ;;  %1693 = vrsqrt.f32 %v2706_v35  ;;  %v2728_v19 = vmul.f32 %v1965_v37, %v954_v27 }
  0xcf   :  { %3528 = vst [vmem:[#allocation36_spill] sm:$0xff] %v2713_v53  ;;  %v955_v17 = vadd.f32 1.0, %v363_v61  ;;  %v1096_v30 = vmax.f32 %v1095_v42, %v2697_v22  ;;  %v2731_v40 = vand.u32 2147483647, %v106_v1  ;;  %1695 = vrsqrt.f32 %v2708_v16 }
  0xd0   :  { %3529 = vst [vmem:[#allocation37_spill] sm:$0xff] %v2720_v49  ;;  %1697 = vrsqrt.f32 %v2717_v15  ;;  %v2739_v34 = vand.u32 2147483647, %v107_v36  ;;  %vm851_vm0 = vcmp.eq.f32.partialorder %v2679_v46, inf  ;;  %vm853_vm1 = vcmp.eq.f32.partialorder %v2679_v46, 0.0 }
  0xd1   :  { %3530 = vst [vmem:[#allocation38_spill] sm:$0xff] %v2728_v19  ;;  %v1097_v0 = vmax.f32 %v1096_v30, %v2713_v53  ;;  %v2736_v54 = vmul.f32 %v1978_v4, %v955_v17  ;;  %1699 = vrsqrt.f32 %v2724_v11  ;;  %v854_v9 = vand.u32 2147483648, %v2679_v46 }
  0xd2   :  { %v1690_v39 = vpop.eup %1689  ;;  %1701 = vrsqrt.f32 %v2731_v40  ;;  %vm863_vm2 = vcmp.eq.f32.partialorder %v2701_v14, inf  ;;  %vm865_vm3 = vcmp.eq.f32.partialorder %v2701_v14, 0.0  ;;  %vm875_vm4 = vcmp.eq.f32.partialorder %v2706_v35, inf }
  0xd3   :  { %3531 = vst [vmem:[#allocation39_spill] sm:$0xff] %v2736_v54  ;;  %v1098_v43 = vmax.f32 %v1097_v0, %v2720_v49  ;;  %v845_v62 = vmul.f32 %v1690_v39, %v2679_v46  ;;  %v1692_v13 = vpop.eup %1691  ;;  %1703 = vrsqrt.f32 %v2739_v34  ;;  %v878_v17 = vand.u32 2147483648, %v2706_v35 }
  0xd4   :  { %v1694_v3 = vpop.eup %1693  ;;  %v857_v50 = vmul.f32 %v1692_v13, %v2701_v14  ;;  %vm877_vm5 = vcmp.eq.f32.partialorder %v2706_v35, 0.0  ;;  %vm887_vm6 = vcmp.eq.f32.partialorder %v2708_v16, inf  ;;  %v890_v0 = vand.u32 2147483648, %v2708_v16 }
  0xd5   :  { %v1099_v32 = vmax.f32 %v1098_v43, %v2728_v19  ;;  %v846_v5 = vmul.f32 %v1690_v39, %v845_v62  ;;  %v1696_v26 = vpop.eup %1695  ;;  %v869_v61 = vmul.f32 %v1694_v3, %v2706_v35  ;;  %v902_v62 = vand.u32 2147483648, %v2717_v15 }
  0xd6   :  { %v1698_v42 = vpop.eup %1697  ;;  %v858_v1 = vmul.f32 %v1692_v13, %v857_v50  ;;  %v881_v30 = vmul.f32 %v1696_v26, %v2708_v16  ;;  %vm889_vm7 = vcmp.eq.f32.partialorder %v2708_v16, 0.0  ;;  %vm899_vm8 = vcmp.eq.f32.partialorder %v2717_v15, inf }
  0xd7   :  { %v1100_v27 = vmax.f32 %v1099_v32, %v2736_v54  ;;  %v847_v58 = vmul.f32 0.5, %v846_v5  ;;  %v870_v36 = vmul.f32 %v1694_v3, %v869_v61  ;;  %v893_v43 = vmul.f32 %v1698_v42, %v2717_v15  ;;  %v1700_v32 = vpop.eup %1699 }
  0xd8   :  { %v859_v50 = vmul.f32 0.5, %v858_v1  ;;  %v882_v29 = vmul.f32 %v1696_v26, %v881_v30  ;;  %v1702_v61 = vpop.eup %1701  ;;  %vm901_vm9 = vcmp.eq.f32.partialorder %v2717_v15, 0.0  ;;  %v905_v49 = vmul.f32 %v1700_v32, %v2724_v11 }
  0xd9   :  { %1101 = vmax.xlane.f32.xlu0 %v1100_v27  ;;  %v848_v5 = vsub.f32 1.5, %v847_v58  ;;  %v871_v54 = vmul.f32 0.5, %v870_v36  ;;  %v894_v19 = vmul.f32 %v1698_v42, %v893_v43  ;;  %v926_v53 = vand.u32 2147483648, %v2731_v40  ;;  %v1704_v30 = vpop.eup %1703 }
  0xda   :  { %v860_v57 = vsub.f32 1.5, %v859_v50  ;;  %v883_v58 = vmul.f32 0.5, %v882_v29  ;;  %vm911_vm10 = vcmp.eq.f32.partialorder %v2724_v11, inf  ;;  %v917_v1 = vmul.f32 %v1702_v61, %v2731_v40 }
  0xdb   :  { %v849_v22 = vmul.f32 %v1690_v39, %v848_v5  ;;  %v872_v52 = vsub.f32 1.5, %v871_v54  ;;  %v895_v31 = vmul.f32 0.5, %v894_v19  ;;  %v906_v27 = vmul.f32 %v1700_v32, %v905_v49 }
  0xdc   :  { %vm913_vm11 = vcmp.eq.f32.partialorder %v2724_v11, 0.0  ;;  %vm923_vm12 = vcmp.eq.f32.partialorder %v2731_v40, inf  ;;  %v861_v60 = vmul.f32 %v1692_v13, %v860_v57  ;;  %v884_v39 = vsub.f32 1.5, %v883_v58 }
  0xdd   :  { %v850_v43 = vmul.f32 %v849_v22, %v2679_v46  ;;  %v918_v5 = vmul.f32 %v1702_v61, %v917_v1  ;;  %vm925_vm13 = vcmp.eq.f32.partialorder %v2731_v40, 0.0  ;;  %v873_v29 = vmul.f32 %v1694_v3, %v872_v52 }
  0xde   :  { %v896_v50 = vsub.f32 1.5, %v895_v31  ;;  %v907_v18 = vmul.f32 0.5, %v906_v27  ;;  %v929_v54 = vmul.f32 %v1704_v30, %v2739_v34  ;;  %v862_v19 = vmul.f32 %v861_v60, %v2701_v14 }
  0xdf   :  { %v852_v49 = vsel %vm851_vm0, %v2679_v46, %v850_v43  ;;  %v885_v10 = vmul.f32 %v1696_v26, %v884_v39  ;;  %v919_v36 = vmul.f32 0.5, %v918_v5  ;;  %v874_v22 = vmul.f32 %v873_v29, %v2706_v35  ;;  %v92_v43 = vld [vmem:[#allocation2 + $0x180] sm:$0xff] }
  0xe0   :  { %v855_v57 = vsel %vm853_vm1, %v854_v9, %v852_v49  ;;  %v897_v13 = vmul.f32 %v1698_v42, %v896_v50  ;;  %v908_v58 = vsub.f32 1.5, %v907_v18  ;;  %vm935_vm14 = vcmp.eq.f32.partialorder %v2739_v34, inf }
  0xe1   :  { %v864_v31 = vsel %vm863_vm2, %v2701_v14, %v862_v19  ;;  %v886_v52 = vmul.f32 %v885_v10, %v2708_v16  ;;  %v920_v3 = vsub.f32 1.5, %v919_v36  ;;  %v930_v27 = vmul.f32 %v1704_v30, %v929_v54  ;;  %v93_v54 = vld [vmem:[#allocation2 + $0x188] sm:$0xff] }
  0xe2   :  { %v3532_v60 = vand.u32 2147483648, %v2701_v14  ;;  %v876_v9 = vsel %vm875_vm4, %v2706_v35, %v874_v22  ;;  %v898_v18 = vmul.f32 %v897_v13, %v2717_v15  ;;  %v909_v26 = vmul.f32 %v1700_v32, %v908_v58 }
  0xe3   :  { %v879_v42 = vsel %vm877_vm5, %v878_v17, %v876_v9  ;;  %v888_v10 = vsel %vm887_vm6, %v2708_v16, %v886_v52  ;;  %v921_v1 = vmul.f32 %v1702_v61, %v920_v3  ;;  %v931_v36 = vmul.f32 0.5, %v930_v27  ;;  %v95_v3 = vld [vmem:[#allocation2 + $0x198] sm:$0xff] }
  0xe4   :  { %v867_v46 = vsel %vm865_vm3, %v3532_v60, %v864_v31  ;;  %v891_v14 = vsel %vm889_vm7, %v890_v0, %v888_v10  ;;  %v900_v39 = vsel %vm899_vm8, %v2717_v15, %v898_v18  ;;  %v910_v5 = vmul.f32 %v909_v26, %v2724_v11  ;;  %v97_v26 = vld [vmem:[#allocation2 + $0x1a8] sm:$0xff] }
  0xe5   :  { %v996_v32 = vadd.f32 1.0, %v855_v57  ;;  %v903_v35 = vsel %vm901_vm9, %v902_v62, %v900_v39  ;;  %v922_v17 = vmul.f32 %v921_v1, %v2731_v40  ;;  %v932_v29 = vsub.f32 1.5, %v931_v36  ;;  %v98_v39 = vld [vmem:[#allocation2 + $0x1b0] sm:$0xff] }
  0xe6   :  { %v997_v50 = vadd.f32 1.0, %v867_v46  ;;  %v912_v61 = vsel %vm911_vm10, %v2724_v11, %v910_v5  ;;  %v998_v16 = vadd.f32 1.0, %v879_v42  ;;  %v999_v0 = vadd.f32 1.0, %v891_v14 }
  0xe7   :  { %v2814_v49 = vand.u32 2147483647, %v92_v43  ;;  %v3533_v19 = vand.u32 2147483648, %v2724_v11  ;;  %v924_v15 = vsel %vm923_vm12, %v2731_v40, %v922_v17  ;;  %v933_v62 = vmul.f32 %v1704_v30, %v932_v29  ;;  %v94_v11 = vld [vmem:[#allocation2 + $0x190] sm:$0xff]  ;;  %v96_v40 = vld [vmem:[#allocation2 + $0x1a0] sm:$0xff] }
  0xe8   :  { %v2824_v22 = vmul.f32 %v1841_v20, %v996_v32  ;;  %v927_v13 = vsel %vm925_vm13, %v926_v53, %v924_v15  ;;  %v1000_v58 = vadd.f32 1.0, %v903_v35  ;;  %v2829_v31 = vmul.f32 %v1847_v23, %v997_v50 }
  0xe9   :  { %v915_v57 = vsel %vm913_vm11, %v3533_v19, %v912_v61  ;;  %v2832_v52 = vmul.f32 %v1870_v47, %v998_v16  ;;  %v934_v27 = vmul.f32 %v933_v62, %v2739_v34  ;;  %vm937_vm15 = vcmp.eq.f32.partialorder %v2739_v34, 0.0 }
  0xea   :  { %3534 = vst [vmem:[#allocation40_spill] sm:$0xff] %v2824_v22  ;;  %v2836_v30 = vand.u32 2147483647, %v93_v54  ;;  %v1001_v60 = vadd.f32 1.0, %v915_v57  ;;  %v2839_v46 = vmul.f32 %v1877_v56, %v999_v0  ;;  %v1148_v53 = vmax.f32 %v2824_v22, %v2829_v31 }
  0xeb   :  { %3535 = vst [vmem:[#allocation41_spill] sm:$0xff] %v2829_v31  ;;  %v936_v9 = vsel %vm935_vm14, %v2739_v34, %v934_v27  ;;  %v1002_v18 = vadd.f32 1.0, %v927_v13  ;;  %v2846_v42 = vand.u32 2147483647, %v94_v11  ;;  %v2848_v10 = vand.u32 2147483647, %v95_v3 }
  0xec   :  { %3536 = vst [vmem:[#allocation42_spill] sm:$0xff] %v2832_v52  ;;  %v3538_v1 = vand.u32 2147483648, %v2739_v34  ;;  %v2853_v43 = vmul.f32 %v1933_v48, %v1000_v58  ;;  %v1149_v14 = vmax.f32 %v1148_v53, %v2832_v52  ;;  %1705 = vrsqrt.f32 %v2814_v49  ;;  %v99_v34 = vld [vmem:[#allocation2 + $0x1b8] sm:$0xff] }
  0xed   :  { %3537 = vst [vmem:[#allocation43_spill] sm:$0xff] %v2839_v46  ;;  %v2857_v5 = vand.u32 2147483647, %v96_v40  ;;  %1707 = vrsqrt.f32 %v2836_v30  ;;  %v2861_v35 = vmul.f32 %v1954_v55, %v1001_v60  ;;  %v2864_v29 = vand.u32 2147483647, %v97_v26 }
  0xee   :  { %v939_v36 = vsel %vm937_vm15, %v3538_v1, %v936_v9  ;;  %3539 = vst [vmem:[#allocation44_spill] sm:$0xff] %v2853_v43  ;;  %v1150_v17 = vmax.f32 %v1149_v14, %v2839_v46  ;;  %1709 = vrsqrt.f32 %v2846_v42  ;;  %v2868_v50 = vmul.f32 %v1965_v37, %v1002_v18 }
  0xef   :  { %v1003_v32 = vadd.f32 1.0, %v939_v36  ;;  %3540 = vst [vmem:[#allocation45_spill] sm:$0xff] %v2861_v35  ;;  %v2871_v16 = vand.u32 2147483647, %v98_v39  ;;  %1711 = vrsqrt.f32 %v2848_v10  ;;  %v2874_v0 = vand.u32 2147483647, %v99_v34 }
  0xf0   :  { %3541 = vst [vmem:[#allocation46_spill] sm:$0xff] %v2868_v50  ;;  %v1151_v61 = vmax.f32 %v1150_v17, %v2853_v43  ;;  %1713 = vrsqrt.f32 %v2857_v5  ;;  %vm755_vm0 = vcmp.eq.f32.partialorder %v2814_v49, inf  ;;  %vm757_vm1 = vcmp.eq.f32.partialorder %v2814_v49, 0.0 }
  0xf1   :  { %v2878_v19 = vmul.f32 %v1978_v4, %v1003_v32  ;;  %1715 = vrsqrt.f32 %v2864_v29  ;;  %v758_v27 = vand.u32 2147483648, %v2814_v49  ;;  %vm767_vm2 = vcmp.eq.f32.partialorder %v2836_v30, inf }
  0xf2   :  { %v1706_v54 = vpop.eup %1705  ;;  %v1152_v57 = vmax.f32 %v1151_v61, %v2861_v35  ;;  %1717 = vrsqrt.f32 %v2871_v16  ;;  %vm769_vm3 = vcmp.eq.f32.partialorder %v2836_v30, 0.0  ;;  %v770_v9 = vand.u32 2147483648, %v2836_v30 }
  0xf3   :  { %3542 = vst [vmem:[#allocation47_spill] sm:$0xff] %v2878_v19  ;;  %v1708_v15 = vpop.eup %1707  ;;  %v749_v62 = vmul.f32 %v1706_v54, %v2814_v49  ;;  %1719 = vrsqrt.f32 %v2874_v0  ;;  %vm779_vm4 = vcmp.eq.f32.partialorder %v2846_v42, inf  ;;  %v782_v36 = vand.u32 2147483648, %v2846_v42 }
  0xf4   :  { %v1153_v13 = vmax.f32 %v1152_v57, %v2868_v50  ;;  %v761_v58 = vmul.f32 %v1708_v15, %v2836_v30  ;;  %v1710_v11 = vpop.eup %1709  ;;  %vm781_vm5 = vcmp.eq.f32.partialorder %v2846_v42, 0.0  ;;  %vm791_vm6 = vcmp.eq.f32.partialorder %v2848_v10, inf }
  0xf5   :  { %v750_v3 = vmul.f32 %v1706_v54, %v749_v62  ;;  %v1712_v60 = vpop.eup %1711  ;;  %v773_v18 = vmul.f32 %v1710_v11, %v2846_v42  ;;  %v806_v57 = vand.u32 2147483648, %v2857_v5  ;;  %vm793_vm7 = vcmp.eq.f32.partialorder %v2848_v10, 0.0 }
  0xf6   :  { %v1154_v53 = vmax.f32 %v1153_v13, %v2878_v19  ;;  %v762_v40 = vmul.f32 %v1708_v15, %v761_v58  ;;  %v1714_v26 = vpop.eup %1713  ;;  %v785_v14 = vmul.f32 %v1712_v60, %v2848_v10  ;;  %vm803_vm8 = vcmp.eq.f32.partialorder %v2857_v5, inf }
  0xf7   :  { %v751_v1 = vmul.f32 0.5, %v750_v3  ;;  %v1716_v32 = vpop.eup %1715  ;;  %v774_v34 = vmul.f32 %v1710_v11, %v773_v18  ;;  %v797_v61 = vmul.f32 %v1714_v26, %v2857_v5  ;;  %v818_v3 = vand.u32 2147483648, %v2864_v29 }
  0xf8   :  { %1155 = vmax.xlane.f32.xlu1 %v1154_v53  ;;  %v763_v17 = vmul.f32 0.5, %v762_v40  ;;  %v786_v13 = vmul.f32 %v1712_v60, %v785_v14  ;;  %v809_v58 = vmul.f32 %v1716_v32, %v2864_v29  ;;  %v1718_v53 = vpop.eup %1717  ;;  %vm805_vm9 = vcmp.eq.f32.partialorder %v2857_v5, 0.0 }
  0xf9   :  { %v752_v62 = vsub.f32 1.5, %v751_v1  ;;  %v775_v18 = vmul.f32 0.5, %v774_v34  ;;  %v798_v39 = vmul.f32 %v1714_v26, %v797_v61  ;;  %vm815_vm10 = vcmp.eq.f32.partialorder %v2864_v29, inf  ;;  %v1720_v1 = vpop.eup %1719 }
  0xfa   :  { %v764_v40 = vsub.f32 1.5, %v763_v17  ;;  %v830_v19 = vand.u32 2147483648, %v2871_v16  ;;  %v787_v50 = vmul.f32 0.5, %v786_v13  ;;  %v810_v35 = vmul.f32 %v1716_v32, %v809_v58 }
  0xfb   :  { %v753_v14 = vmul.f32 %v1706_v54, %v752_v62  ;;  %vm817_vm11 = vcmp.eq.f32.partialorder %v2864_v29, 0.0  ;;  %v821_v43 = vmul.f32 %v1718_v53, %v2871_v16  ;;  %v776_v52 = vsub.f32 1.5, %v775_v18 }
  0xfc   :  { %v765_v46 = vmul.f32 %v1708_v15, %v764_v40  ;;  %v799_v31 = vmul.f32 0.5, %v798_v39  ;;  %vm827_vm12 = vcmp.eq.f32.partialorder %v2871_v16, inf  ;;  %v833_v17 = vmul.f32 %v1720_v1, %v2874_v0 }
  0xfd   :  { %v754_v34 = vmul.f32 %v753_v14, %v2814_v49  ;;  %v788_v61 = vsub.f32 1.5, %v787_v50  ;;  %v811_v22 = vmul.f32 0.5, %v810_v35  ;;  %v822_v41 = vmul.f32 %v1718_v53, %v821_v43 }
  0xfe   :  { %vm829_vm13 = vcmp.eq.f32.partialorder %v2871_v16, 0.0  ;;  %v766_v54 = vmul.f32 %v765_v46, %v2836_v30  ;;  %v777_v62 = vmul.f32 %v1710_v11, %v776_v52  ;;  %v800_v13 = vsub.f32 1.5, %v799_v31 }
  0xff   :  { %v834_v58 = vmul.f32 %v1720_v1, %v833_v17  ;;  %v756_v15 = vsel %vm755_vm0, %v2814_v49, %v754_v34  ;;  %v789_v39 = vmul.f32 %v1712_v60, %v788_v61  ;;  %v812_v40 = vsub.f32 1.5, %v811_v22 }
 0x100   :  { %v823_v18 = vmul.f32 0.5, %v822_v41  ;;  %vm839_vm14 = vcmp.eq.f32.partialorder %v2874_v0, inf  ;;  %v759_v35 = vsel %vm757_vm1, %v758_v27, %v756_v15  ;;  %v768_v43 = vsel %vm767_vm2, %v2836_v30, %v766_v54 }
 0x101   :  { %v778_v52 = vmul.f32 %v777_v62, %v2846_v42  ;;  %v801_v31 = vmul.f32 %v1714_v26, %v800_v13  ;;  %v771_v46 = vsel %vm769_vm3, %v770_v9, %v768_v43  ;;  %v790_v50 = vmul.f32 %v789_v39, %v2848_v10 }
 0x102   :  { %v813_v11 = vmul.f32 %v1716_v32, %v812_v40  ;;  %v824_v22 = vsub.f32 1.5, %v823_v18  ;;  %v835_v27 = vmul.f32 0.5, %v834_v58  ;;  %v988_v60 = vadd.f32 1.0, %v759_v35 }
 0x103   :  { %v780_v41 = vsel %vm779_vm4, %v2846_v42, %v778_v52  ;;  %v802_v49 = vmul.f32 %v801_v31, %v2857_v5  ;;  %v792_v30 = vsel %vm791_vm6, %v2848_v10, %v790_v50  ;;  %v3543_v32 = vand.u32 2147483648, %v2848_v10 }
 0x104   :  { %v783_v14 = vsel %vm781_vm5, %v782_v36, %v780_v41  ;;  %v814_v9 = vmul.f32 %v813_v11, %v2864_v29  ;;  %v825_v26 = vmul.f32 %v1718_v53, %v824_v22  ;;  %v836_v61 = vsub.f32 1.5, %v835_v27  ;;  %v1129_v41 = vpop.xlane.xlu2 %1128 }
 0x105   :  { %v795_v17 = vsel %vm793_vm7, %v3543_v32, %v792_v30  ;;  %v804_v34 = vsel %vm803_vm8, %v2857_v5, %v802_v49  ;;  %v989_v54 = vadd.f32 1.0, %v771_v46  ;;  %v990_v62 = vadd.f32 1.0, %v783_v14  ;;  %v1093_v49 = vpop.xlane.xlu0 %1092 }
 0x106   :  { %v807_v42 = vsel %vm805_vm9, %v806_v57, %v804_v34  ;;  %v816_v36 = vsel %vm815_vm10, %v2864_v29, %v814_v9  ;;  %v826_v53 = vmul.f32 %v825_v26, %v2871_v16  ;;  %v837_v13 = vmul.f32 %v1720_v1, %v836_v61 }
 0x107   :  { %v819_v10 = vsel %vm817_vm11, %v818_v3, %v816_v36  ;;  %v842_v58 = vand.u32 2147483648, %v2874_v0  ;;  %v991_v15 = vadd.f32 1.0, %v795_v17  ;;  %v992_v5 = vadd.f32 1.0, %v807_v42 }
 0x108   :  { %v828_v39 = vsel %vm827_vm12, %v2871_v16, %v826_v53  ;;  %v2960_v57 = vmul.f32 %v1841_v20, %v988_v60  ;;  %v2963_v40 = vmul.f32 %v1847_v23, %v989_v54  ;;  %v838_v29 = vmul.f32 %v837_v13, %v2874_v0 }
 0x109   :  { %v831_v18 = vsel %vm829_vm13, %v830_v19, %v828_v39  ;;  %vm841_vm15 = vcmp.eq.f32.partialorder %v2874_v0, 0.0  ;;  %v2970_v3 = vmul.f32 %v1870_v47, %v990_v62  ;;  %v993_v1 = vadd.f32 1.0, %v819_v10 }
 0x10a   :  { %v2973_v35 = vmul.f32 %v1877_v56, %v991_v15  ;;  %v1139_v20 = vmax.f32 %v2960_v57, %v2963_v40  ;;  %v840_v23 = vsel %vm839_vm14, %v2874_v0, %v838_v29  ;;  %v994_v19 = vadd.f32 1.0, %v831_v18 }
 0x10b   :  { %v843_v16 = vsel %vm841_vm15, %v842_v58, %v840_v23  ;;  %v2981_v43 = vmul.f32 %v1933_v48, %v992_v5  ;;  %v2985_v31 = vmul.f32 %v1954_v55, %v993_v1  ;;  %v1111_v55 = vpop.xlane.xlu1 %1110  ;;  %v3000_v30 = vmax.f32 %v1093_v49, 1e-30 }
 0x10c   :  { %v1140_v52 = vmax.f32 %v1139_v20, %v2970_v3  ;;  %v995_v47 = vadd.f32 1.0, %v843_v16  ;;  %v2989_v46 = vmul.f32 %v1965_v37, %v994_v19  ;;  %v2998_v27 = vmax.f32 %v1111_v55, 1e-30  ;;  %v1138_v60 = vpop.xlane.xlu2 %1137 }
 0x10d   :  { %v1161_v37 = vmax.f32 %v1129_v41, 1e-30  ;;  %v3002_v9 = vmax.f32 %v1138_v60, 1e-30  ;;  %v1176_v60 = vand.u32 2147483648, %v3000_v30  ;;  %vm1170_vm11 = vweird.f32 %v3000_v30 }
 0x10e   :  { %v1141_v56 = vmax.f32 %v1140_v52, %v2973_v35  ;;  %v2993_v0 = vmul.f32 %v1978_v4, %v995_v47  ;;  %1721 = vrcp.f32 %v2998_v27  ;;  %v1204_v23 = vand.u32 2147483647, %v2998_v27 }
 0x10f   :  { %1723 = vrcp.f32 %v1161_v37  ;;  %v1234_v39 = vand.u32 2147483647, %v1161_v37  ;;  %v1236_v18 = vand.u32 2147483648, %v1161_v37  ;;  %vm1230_vm0 = vweird.f32 %v1161_v37 }
 0x110   :  { %v1142_v50 = vmax.f32 %v1141_v56, %v2981_v43  ;;  %1725 = vrcp.f32 %v3000_v30  ;;  %vm1200_vm3 = vweird.f32 %v2998_v27  ;;  %vm3050_vm5 = vcmp.eq.f32.partialorder %v1204_v23, 8.507059e+37 }
 0x111   :  { %1727 = vrcp.f32 %v3002_v9  ;;  %vm3038_vm2 = vcmp.eq.f32.partialorder %v1234_v39, 8.507059e+37  ;;  %v1237_v56 = vor.u32 1.1754944e-38, %v1236_v18  ;;  %vm1245_vm6 = vweird.f32 %v3002_v9 }
 0x112   :  { %v1143_v11 = vmax.f32 %v1142_v50, %v2985_v31  ;;  %v1206_v50 = vand.u32 2147483648, %v2998_v27 }
 0x114   :  { %v1144_v48 = vmax.f32 %v1143_v11, %v2989_v46  ;;  %v3010_v32 = vpop.eup %1721 }
 0x115   :  { %v3012_v17 = vpop.eup %1723  ;;  %v1196_v42 = vmul.f32 %v3010_v32, %v2998_v27  ;;  %vm1201_vm4 = vweird.f32 %v3010_v32 }
 0x116   :  { %v1145_v22 = vmax.f32 %v1144_v48, %v2993_v0  ;;  %v3016_v61 = vpop.eup %1725  ;;  %v1226_v53 = vmul.f32 %v3012_v17, %v1161_v37  ;;  %vm1231_vm1 = vweird.f32 %v3012_v17  ;;  %vm3072_vm10 = vmor %vm1200_vm3, %vm1201_vm4  ;;  %v1174_v37 = vand.u32 2147483647, %v3000_v30 }
 0x117   :  { %v3018_v54 = vpop.eup %1727  ;;  %v1166_v62 = vmul.f32 %v3016_v61, %v3000_v30  ;;  %v1197_v13 = vsub.f32 1.0, %v1196_v42  ;;  %vm3062_vm8 = vmor %vm1230_vm0, %vm1231_vm1  ;;  %vm1171_vm9 = vweird.f32 %v3016_v61  ;;  %v1249_v42 = vand.u32 2147483647, %v3002_v9 }
 0x118   :  { %1146 = vmax.xlane.f32.xlu0 %v1145_v22  ;;  %v1241_v10 = vmul.f32 %v3018_v54, %v3002_v9  ;;  %v1227_v15 = vsub.f32 1.0, %v1226_v53  ;;  %vm1246_vm7 = vweird.f32 %v3018_v54  ;;  %v1251_v53 = vand.u32 2147483648, %v3002_v9  ;;  %vm3094_vm15 = vmor %vm1170_vm11, %vm1171_vm9 }
 0x119   :  { %v1167_v5 = vsub.f32 1.0, %v1166_v62  ;;  %v1198_v20 = vmul.f32 %v3010_v32, %v1197_v13  ;;  %vm3082_vm12 = vmor %vm1245_vm6, %vm1246_vm7  ;;  %v1207_v9 = vor.u32 1.1754944e-38, %v1206_v50  ;;  %vm3102_vm0 = vcmp.eq.f32.partialorder %v1249_v42, 8.507059e+37 }
 0x11a   :  { %v1242_v29 = vsub.f32 1.0, %v1241_v10  ;;  %v1228_v19 = vmul.f32 %v3012_v17, %v1227_v15  ;;  %vm1175_vm3 = vcmp.eq.f32.partialorder %v1174_v37, 8.507059e+37 }
 0x11b   :  { %v1168_v47 = vmul.f32 %v3016_v61, %v1167_v5  ;;  %v1199_v22 = vadd.f32 %v3010_v32, %v1198_v20  ;;  %v1252_v20 = vor.u32 1.1754944e-38, %v1251_v53 }
 0x11c   :  { %v1243_v11 = vmul.f32 %v3018_v54, %v1242_v29  ;;  %v1229_v49 = vadd.f32 %v3012_v17, %v1228_v19 }
 0x11e   :  { %v1244_v10 = vadd.f32 %v3018_v54, %v1243_v11  ;;  %v1233_v30 = vsel %vm3062_vm8, %v3012_v17, %v1229_v49 }
 0x11f   :  { %v3121_v11 = vsel %vm3038_vm2, %v1237_v56, %v1233_v30 }
 0x120   :  { %v1248_v19 = vsel %vm3082_vm12, %v3018_v54, %v1244_v10 }
 0x121   :  { %v3133_v52 = vsel %vm3102_vm0, %v1252_v20, %v1248_v19  ;;  %vm1574_vm0 = vcmask 7168  }
 0x12c   :  { %v1120_v14 = vpop.xlane.xlu1 %1119 }
 0x12d   :  { %v3005_v4 = vmax.f32 %v1120_v14, 1e-30 }
 0x12f   :  { %1729 = vrcp.f32 %v3005_v4  ;;  %vm1215_vm13 = vweird.f32 %v3005_v4  ;;  %v1221_v5 = vand.u32 2147483648, %v3005_v4  ;;  %v1219_v17 = vand.u32 2147483647, %v3005_v4 }
 0x131   :  { %vm1220_vm2 = vcmp.eq.f32.partialorder %v1219_v17, 8.507059e+37 }
 0x135   :  { %v3022_v36 = vpop.eup %1729 }
 0x136   :  { %v1211_v58 = vmul.f32 %v3022_v36, %v3005_v4  ;;  %vm1216_vm14 = vweird.f32 %v3022_v36 }
 0x137   :  { %vm3112_vm1 = vmor %vm1215_vm13, %vm1216_vm14 }
 0x138   :  { %v1212_v16 = vsub.f32 1.0, %v1211_v58  ;;  %v1203_v58 = vsel %vm3072_vm10, %v3010_v32, %v1199_v22  ;;  %v1177_v32 = vor.u32 1.1754944e-38, %v1176_v60  ;;  %v1222_v22 = vor.u32 1.1754944e-38, %v1221_v5 }
 0x13a   :  { %v1213_v55 = vmul.f32 %v3022_v36, %v1212_v16  ;;  %v1208_v16 = vsel %vm3050_vm5, %v1207_v9, %v1203_v58 }
 0x13b   :  { %v1301_v56 = vmul.f32 %v1208_v16, %v2092_v38  ;;  %v1302_v49 = vmul.f32 %v1208_v16, %v2095_v44  ;;  %v1303_v14 = vmul.f32 %v1208_v16, %v2104_v6  ;;  %v1304_v44 = vmul.f32 %v1208_v16, %v2107_v33 }
 0x13c   :  { %v1214_v27 = vadd.f32 %v3022_v36, %v1213_v55  ;;  %v43_v55 = vld [vmem:[#allocation4 + $0x1] ss:$2 sm:$0xff]  ;;  %v1305_v6 = vmul.f32 %v1208_v16, %v2123_v63  ;;  %v1307_v30 = vmul.f32 %v1208_v16, %v2138_v12  ;;  %v1308_v63 = vmul.f32 %v1208_v16, %v2146_v45 }
 0x13d   :  { %v3147_v42 = vperm.slane %v43_v55, 0  ;;  %v3149_v53 = vperm.slane %v43_v55, 1  ;;  %v3152_v62 = vperm.slane %v43_v55, 2  ;;  %v3154_v37 = vperm.slane %v43_v55, 3 }
 0x13e   :  { %v1218_v4 = vsel %vm3112_vm1, %v3022_v36, %v1214_v27  ;;  %v1306_v27 = vmul.f32 %v1208_v16, %v2130_v2  ;;  %v3174_v39 = vperm.slane %v43_v55, 5  ;;  %v3178_v5 = vperm.slane %v43_v55, 7 }
 0x13f   :  { %v3137_v36 = vsel %vm1220_vm2, %v1222_v22, %v1218_v4  ;;  %v1383_v58 = vsub.f32 %v1302_v49, %v3149_v53  ;;  %v1384_v9 = vsub.f32 %v1303_v14, %v3152_v62  ;;  %v1385_v29 = vsub.f32 %v1304_v44, %v3154_v37 }
 0x141   :  { %v1447_v20 = vmul.f32 %v1383_v58, %v1383_v58 }
 0x14c   :  { %v1102_v26 = vpop.xlane.xlu0 %1101 }
 0x14d   :  { %v3014_v34 = vmax.f32 %v1102_v26, 1e-30  ;;  %v1169_v26 = vadd.f32 %v3016_v61, %v1168_v47 }
 0x14f   :  { %1731 = vrcp.f32 %v3014_v34  ;;  %v1173_v18 = vsel %vm3094_vm15, %v3016_v61, %v1169_v26  ;;  %v1191_v41 = vand.u32 2147483648, %v3014_v34  ;;  %vm1185_vm5 = vweird.f32 %v3014_v34 }
 0x150   :  { %v3127_v54 = vsel %vm1175_vm3, %v1177_v32, %v1173_v18  ;;  %v3176_v32 = vperm.slane %v43_v55, 6 }
 0x151   :  { %v1192_v38 = vor.u32 1.1754944e-38, %v1191_v41  ;;  %v1285_v19 = vmul.f32 %v3127_v54, %v2234_v21  ;;  %v1286_v47 = vmul.f32 %v3127_v54, %v2239_v24  ;;  %v1287_v22 = vmul.f32 %v3127_v54, %v2242_v8 }
 0x152   :  { %v1388_v4 = vsub.f32 %v1307_v30, %v3176_v32  ;;  %v1288_v49 = vmul.f32 %v3127_v54, %v2249_v7  ;;  %v1289_v21 = vmul.f32 %v3127_v54, %v2263_v25  ;;  %v1290_v24 = vmul.f32 %v3127_v54, %v2271_v28 }
 0x153   :  { %v1367_v14 = vsub.f32 %v1286_v47, %v3149_v53  ;;  %v1368_v44 = vsub.f32 %v1287_v22, %v3152_v62  ;;  %v1291_v7 = vmul.f32 %v3127_v54, %v2278_v51  ;;  %v1292_v28 = vmul.f32 %v3127_v54, %v2288_v59  ;;  %v3565_v54 = vld [vmem:[#allocation17_spill] sm:$0xff]  ;;  %v3568_v22 = vld [vmem:[#allocation20_spill] sm:$0xff] }
 0x154   :  { %v1369_v58 = vsub.f32 %v1288_v49, %v3154_v37 }
 0x155   :  { %v3032_v1 = vpop.eup %1731  ;;  %v1372_v59 = vsub.f32 %v1291_v7, %v3176_v32 }
 0x156   :  { %v1181_v48 = vmul.f32 %v3032_v1, %v3014_v34  ;;  %vm1186_vm4 = vweird.f32 %v3032_v1 }
 0x157   :  { %vm3156_vm7 = vmor %vm1185_vm5, %vm1186_vm4 }
 0x158   :  { %v1182_v13 = vsub.f32 1.0, %v1181_v48  ;;  %v1189_v48 = vand.u32 2147483647, %v3014_v34  ;;  %v3161_v34 = vperm.slane %v43_v55, 4  ;;  %v1449_v55 = vmul.f32 %v1385_v29, %v1385_v29 }
 0x159   :  { %v1432_v29 = vmul.f32 %v1368_v44, %v1368_v44 }
 0x15a   :  { %v1183_v61 = vmul.f32 %v3032_v1, %v1182_v13  ;;  %vm3143_vm6 = vcmp.eq.f32.partialorder %v1189_v48, 8.507059e+37  ;;  %v1382_v13 = vsub.f32 %v1301_v56, %v3147_v42  ;;  %v1386_v17 = vsub.f32 %v1305_v6, %v3161_v34 }
 0x15b   :  { %v1389_v48 = vsub.f32 %v1308_v63, %v3178_v5  ;;  %v1452_v6 = vmul.f32 %v1388_v4, %v1388_v4  ;;  %v1371_v63 = vsub.f32 %v1290_v24, %v3174_v39  ;;  %v1433_v4 = vmul.f32 %v1369_v58, %v1369_v58 }
 0x15c   :  { %v1184_v60 = vadd.f32 %v3032_v1, %v1183_v61  ;;  %v1387_v61 = vsub.f32 %v1306_v27, %v3174_v39 }
 0x15d   :  { %v1453_v30 = vmul.f32 %v1389_v48, %v1389_v48 }
 0x15e   :  { %v1188_v33 = vsel %vm3156_vm7, %v3032_v1, %v1184_v60  ;;  %v1446_v1 = vmul.f32 %v1382_v13, %v1382_v13  ;;  %v1366_v60 = vsub.f32 %v1285_v19, %v3147_v42  ;;  %v1451_v10 = vmul.f32 %v1387_v61, %v1387_v61 }
 0x15f   :  { %v3185_v2 = vsel %vm3143_vm6, %v1192_v38, %v1188_v33  ;;  %v1450_v38 = vmul.f32 %v1386_v17, %v1386_v17  ;;  %v1431_v33 = vmul.f32 %v1367_v14, %v1367_v14  ;;  %v3566_v17 = vld [vmem:[#allocation18_spill] sm:$0xff]  ;;  %v1373_v61 = vsub.f32 %v1292_v28, %v3178_v5 }
 0x160   :  { %v1512_v16 = vadd.f32 %v1447_v20, %v1446_v1  ;;  %v1430_v13 = vmul.f32 %v1366_v60, %v1366_v60  ;;  %v3564_v20 = vld [vmem:[#allocation16_spill] sm:$0xff] }
 0x161   :  { %v1325_v51 = vmul.f32 %v3133_v52, %v3564_v20 }
 0x162   :  { %v1494_v1 = vadd.f32 %v1431_v33, %v1430_v13 }
 0x164   :  { %v1495_v48 = vadd.f32 %v1494_v1, %v1432_v29  ;;  %v3572_v1 = vld [vmem:[#allocation24_spill] sm:$0xff] }
 0x165   :  { %v1309_v20 = vmul.f32 %v3137_v36, %v3572_v1 }
 0x166   :  { %v1496_v60 = vadd.f32 %v1495_v48, %v1433_v4 }
 0x16b   :  { %v1156_v23 = vpop.xlane.xlu1 %1155 }
 0x16c   :  { %v3117_v50 = vmax.f32 %v1156_v23, 1e-30  ;;  %v1448_v23 = vmul.f32 %v1384_v9, %v1384_v9  ;;  %v1370_v9 = vsub.f32 %v1289_v21, %v3161_v34 }
 0x16e   :  { %1733 = vrcp.f32 %v3117_v50  ;;  %v1279_v12 = vand.u32 2147483647, %v3117_v50  ;;  %v1281_v45 = vand.u32 2147483648, %v3117_v50  ;;  %v1513_v56 = vadd.f32 %v1512_v16, %v1448_v23  ;;  %v3567_v16 = vld [vmem:[#allocation19_spill] sm:$0xff] }
 0x16f   :  { %vm1275_vm8 = vweird.f32 %v3117_v50  ;;  %v1327_v23 = vmul.f32 %v3133_v52, %v3566_v17  ;;  %v1328_v19 = vmul.f32 %v3133_v52, %v3567_v16  ;;  %v1434_v24 = vmul.f32 %v1370_v9, %v1370_v9 }
 0x170   :  { %v3207_v26 = vor.u32 1.1754944e-38, %v1281_v45  ;;  %v1514_v8 = vadd.f32 %v1513_v56, %v1449_v55  ;;  %v1326_v45 = vmul.f32 %v3133_v52, %v3565_v54  ;;  %v1406_v55 = vsub.f32 %v1325_v51, %v3147_v42  ;;  %v3573_v51 = vld [vmem:[#allocation25_spill] sm:$0xff] }
 0x171   :  { %v1408_v49 = vsub.f32 %v1327_v23, %v3152_v62  ;;  %v1409_v14 = vsub.f32 %v1328_v19, %v3154_v37  ;;  %v1497_v13 = vadd.f32 %v1496_v60, %v1434_v24  ;;  %v1310_v54 = vmul.f32 %v3137_v36, %v3573_v51  ;;  %v3574_v23 = vld [vmem:[#allocation26_spill] sm:$0xff]  ;;  %v3578_v60 = vld [vmem:[#allocation28_spill] sm:$0xff] }
 0x172   :  { %v1515_v25 = vadd.f32 %v1514_v8, %v1450_v38  ;;  %v1407_v56 = vsub.f32 %v1326_v45, %v3149_v53  ;;  %v1435_v38 = vmul.f32 %v1371_v63, %v1371_v63  ;;  %v3569_v8 = vld [vmem:[#allocation21_spill] sm:$0xff]  ;;  %v1470_v7 = vmul.f32 %v1406_v55, %v1406_v55 }
 0x173   :  { %v1330_v44 = vmul.f32 %v3133_v52, %v3569_v8  ;;  %v1472_v33 = vmul.f32 %v1408_v49, %v1408_v49  ;;  %v1473_v63 = vmul.f32 %v1409_v14, %v1409_v14  ;;  %v1313_v14 = vmul.f32 %v3137_v36, %v3578_v60  ;;  %v3579_v8 = vld [vmem:[#allocation29_spill] sm:$0xff]  ;;  %v3585_v60 = vld [vmem:[#allocation35_spill] sm:$0xff] }
 0x174   :  { %v3165_v15 = vpop.eup %1733  ;;  %v1471_v58 = vmul.f32 %v1407_v56, %v1407_v56  ;;  %vm3326_vm14 = vcmp.eq.f32.partialorder %v1279_v12, 8.507059e+37 }
 0x175   :  { %v1271_v18 = vmul.f32 %v3165_v15, %v3117_v50  ;;  %vm1276_vm9 = vweird.f32 %v3165_v15  ;;  %v1411_v17 = vsub.f32 %v1330_v44, %v3174_v39  ;;  %v1314_v44 = vmul.f32 %v3137_v36, %v3579_v8 }
 0x176   :  { %v1539_v29 = vadd.f32 %v1471_v58, %v1470_v7  ;;  %vm3265_vm10 = vmor %vm1275_vm8, %vm1276_vm9  ;;  %v3581_v58 = vld [vmem:[#allocation31_spill] sm:$0xff] }
 0x177   :  { %v1272_v41 = vsub.f32 1.0, %v1271_v18  ;;  %v1516_v18 = vadd.f32 %v1515_v25, %v1451_v10  ;;  %v3570_v10 = vld [vmem:[#allocation22_spill] sm:$0xff]  ;;  %v3571_v25 = vld [vmem:[#allocation23_spill] sm:$0xff] }
 0x178   :  { %v1332_v28 = vmul.f32 %v3133_v52, %v3571_v25  ;;  %v1540_v48 = vadd.f32 %v1539_v29, %v1472_v33  ;;  %v3580_v25 = vld [vmem:[#allocation30_spill] sm:$0xff]  ;;  %v1316_v33 = vmul.f32 %v3137_v36, %v3581_v58 }
 0x179   :  { %v1273_v27 = vmul.f32 %v3165_v15, %v1272_v41  ;;  %v1517_v47 = vadd.f32 %v1516_v18, %v1452_v6  ;;  %v1329_v41 = vmul.f32 %v3133_v52, %v3568_v22  ;;  %v1331_v6 = vmul.f32 %v3133_v52, %v3570_v10 }
 0x17a   :  { %v1498_v18 = vadd.f32 %v1497_v13, %v1435_v38  ;;  %v1437_v52 = vmul.f32 %v1373_v61, %v1373_v61  ;;  %v1413_v4 = vsub.f32 %v1332_v28, %v3178_v5  ;;  %v1391_v61 = vsub.f32 %v1310_v54, %v3149_v53 }
 0x17b   :  { %v1518_v21 = vadd.f32 %v1517_v47, %v1453_v30  ;;  %v1436_v30 = vmul.f32 %v1372_v59, %v1372_v59  ;;  %v1410_v9 = vsub.f32 %v1329_v41, %v3161_v34  ;;  %v3248_v45 = vadd.f32 %v3165_v15, %v1273_v27  ;;  %v3575_v41 = vld [vmem:[#allocation27_spill] sm:$0xff] }
 0x17c   :  { %v1311_v59 = vmul.f32 %v3137_v36, %v3574_v23  ;;  %v1412_v47 = vsub.f32 %v1331_v6, %v3176_v32  ;;  %v1312_v55 = vmul.f32 %v3137_v36, %v3575_v41  ;;  %v1390_v27 = vsub.f32 %v1309_v20, %v3147_v42 }
 0x17d   :  { %1519 = vadd.xlane.f32.xlu1 %v1518_v21  ;;  %v1499_v19 = vadd.f32 %v1498_v18, %v1436_v30  ;;  %v1474_v21 = vmul.f32 %v1410_v9, %v1410_v9  ;;  %v1541_v24 = vadd.f32 %v1540_v48, %v1473_v63  ;;  %v1278_v38 = vsel %vm3265_vm10, %v3165_v15, %v3248_v45 }
 0x17e   :  { %v1392_v10 = vsub.f32 %v1311_v59, %v3152_v62  ;;  %v1475_v6 = vmul.f32 %v1411_v17, %v1411_v17  ;;  %v1476_v7 = vmul.f32 %v1412_v47, %v1412_v47  ;;  %v1315_v28 = vmul.f32 %v3137_v36, %v3580_v25  ;;  %v3582_v36 = vld [vmem:[#allocation32_spill] sm:$0xff]  ;;  %v3584_v47 = vld [vmem:[#allocation34_spill] sm:$0xff] }
 0x17f   :  { %v1500_v49 = vadd.f32 %v1499_v19, %v1437_v52  ;;  %v1542_v13 = vadd.f32 %v1541_v24, %v1474_v21  ;;  %v1393_v30 = vsub.f32 %v1312_v55, %v3154_v37  ;;  %v1454_v9 = vmul.f32 %v1390_v27, %v1390_v27 }
 0x180   :  { %v1455_v63 = vmul.f32 %v1391_v61, %v1391_v61  ;;  %v1477_v29 = vmul.f32 %v1413_v4, %v1413_v4  ;;  %v1394_v20 = vsub.f32 %v1313_v14, %v3161_v34  ;;  %v1395_v54 = vsub.f32 %v1314_v44, %v3174_v39  ;;  %v3586_v44 = vld [vmem:[#allocation36_spill] sm:$0xff] }
 0x181   :  { %1501 = vadd.xlane.f32.xlu2 %v1500_v49  ;;  %v1543_v1 = vadd.f32 %v1542_v13, %v1475_v6  ;;  %v1456_v52 = vmul.f32 %v1392_v10, %v1392_v10  ;;  %v1293_v59 = vmul.f32 %v3185_v2, %v3582_v36  ;;  %v1295_v4 = vmul.f32 %v3185_v2, %v3584_v47 }
 0x182   :  { %v1521_v17 = vadd.f32 %v1455_v63, %v1454_v9  ;;  %v1396_v41 = vsub.f32 %v1315_v28, %v3176_v32  ;;  %v1397_v55 = vsub.f32 %v1316_v33, %v3178_v5  ;;  %v1457_v27 = vmul.f32 %v1393_v30, %v1393_v30  ;;  %v3587_v28 = vld [vmem:[#allocation37_spill] sm:$0xff] }
 0x183   :  { %v1544_v23 = vadd.f32 %v1543_v1, %v1476_v7  ;;  %v1458_v24 = vmul.f32 %v1394_v20, %v1394_v20  ;;  %v1296_v14 = vmul.f32 %v3185_v2, %v3585_v60  ;;  %v1297_v10 = vmul.f32 %v3185_v2, %v3586_v44 }
 0x184   :  { %v1522_v61 = vadd.f32 %v1521_v17, %v1456_v52  ;;  %v1374_v6 = vsub.f32 %v1293_v59, %v3147_v42  ;;  %v1459_v25 = vmul.f32 %v1395_v54, %v1395_v54  ;;  %v1298_v58 = vmul.f32 %v3185_v2, %v3587_v28  ;;  %v3590_v54 = vld [vmem:[#allocation38_spill] sm:$0xff]  ;;  %v3591_v59 = vld [vmem:[#allocation39_spill] sm:$0xff] }
 0x185   :  { %v1545_v21 = vadd.f32 %v1544_v23, %v1477_v29  ;;  %v1376_v33 = vsub.f32 %v1295_v4, %v3152_v62  ;;  %v1460_v9 = vmul.f32 %v1396_v41, %v1396_v41  ;;  %v1461_v63 = vmul.f32 %v1397_v55, %v1397_v55 }
 0x186   :  { %v1523_v8 = vadd.f32 %v1522_v61, %v1457_v27  ;;  %v1377_v20 = vsub.f32 %v1296_v14, %v3154_v37  ;;  %v1438_v52 = vmul.f32 %v1374_v6, %v1374_v6  ;;  %v1299_v36 = vmul.f32 %v3185_v2, %v3590_v54  ;;  %v3592_v27 = vld [vmem:[#allocation8_spill] sm:$0xff]  ;;  %v3599_v6 = vld [vmem:[#allocation11_spill] sm:$0xff] }
 0x187   :  { %1546 = vadd.xlane.f32.xlu1 %v1545_v21  ;;  %v1379_v47 = vsub.f32 %v1298_v58, %v3174_v39  ;;  %v1440_v4 = vmul.f32 %v1376_v33, %v1376_v33  ;;  %v1317_v61 = vmul.f32 %v3121_v11, %v3592_v27  ;;  %v3600_v58 = vld [vmem:[#allocation12_spill] sm:$0xff] }
 0x188   :  { %v1524_v29 = vadd.f32 %v1523_v8, %v1458_v24  ;;  %v3594_v24 = vld [vmem:[#allocation10_spill] sm:$0xff]  ;;  %v1441_v44 = vmul.f32 %v1377_v20, %v1377_v20 }
 0x189   :  { %v1319_v60 = vmul.f32 %v3121_v11, %v3594_v24  ;;  %v1398_v33 = vsub.f32 %v1317_v61, %v3147_v42 }
 0x18a   :  { %v1525_v23 = vadd.f32 %v1524_v29, %v1459_v25  ;;  %v1443_v29 = vmul.f32 %v1379_v47, %v1379_v47  ;;  %v3603_v47 = vld [vmem:[#allocation15_spill] sm:$0xff] }
 0x18b   :  { %v1147_v16 = vpop.xlane.xlu0 %1146 }
 0x18c   :  { %v3255_v22 = vmax.f32 %v1147_v16, 1e-30  ;;  %v3583_v16 = vld [vmem:[#allocation33_spill] sm:$0xff]  ;;  %v1526_v55 = vadd.f32 %v1525_v23, %v1460_v9  ;;  %v1462_v23 = vmul.f32 %v1398_v33, %v1398_v33 }
 0x18d   :  { %v1294_v19 = vmul.f32 %v3185_v2, %v3583_v16  ;;  %v1300_v16 = vmul.f32 %v3185_v2, %v3591_v59 }
 0x18e   :  { %1735 = vrcp.f32 %v3255_v22  ;;  %v1264_v18 = vand.u32 2147483647, %v3255_v22  ;;  %vm1260_vm11 = vweird.f32 %v3255_v22  ;;  %v1266_v51 = vand.u32 2147483648, %v3255_v22 }
 0x18f   :  { %v1375_v7 = vsub.f32 %v1294_v19, %v3149_v53  ;;  %v1527_v12 = vadd.f32 %v1526_v55, %v1461_v63  ;;  %v1381_v9 = vsub.f32 %v1300_v16, %v3178_v5 }
 0x190   :  { %vm3307_vm13 = vcmp.eq.f32.partialorder %v1264_v18, 8.507059e+37  ;;  %v1378_v18 = vsub.f32 %v1297_v10, %v3161_v34  ;;  %v1267_v8 = vor.u32 1.1754944e-38, %v1266_v51 }
 0x191   :  { %v1439_v17 = vmul.f32 %v1375_v7, %v1375_v7  ;;  %v1320_v7 = vmul.f32 %v3121_v11, %v3599_v6  ;;  %1528 = vadd.xlane.f32.xlu2 %v1527_v12 }
 0x192   :  { %v1442_v25 = vmul.f32 %v1378_v18, %v1378_v18 }
 0x193   :  { %v1503_v41 = vadd.f32 %v1439_v17, %v1438_v52  ;;  %v3601_v52 = vld [vmem:[#allocation13_spill] sm:$0xff] }
 0x194   :  { %v1736_v48 = vpop.eup %1735  ;;  %v1322_v17 = vmul.f32 %v3121_v11, %v3601_v52 }
 0x195   :  { %v1256_v49 = vmul.f32 %v1736_v48, %v3255_v22  ;;  %vm1261_vm12 = vweird.f32 %v1736_v48  ;;  %v1504_v10 = vadd.f32 %v1503_v41, %v1440_v4  ;;  %v1321_v22 = vmul.f32 %v3121_v11, %v3600_v58 }
 0x196   :  { %vm3333_vm15 = vmor %vm1260_vm11, %vm1261_vm12  ;;  %v1324_v4 = vmul.f32 %v3121_v11, %v3603_v47 }
 0x197   :  { %v1257_v13 = vsub.f32 1.0, %v1256_v49  ;;  %v3593_v49 = vld [vmem:[#allocation9_spill] sm:$0xff]  ;;  %v1505_v28 = vadd.f32 %v1504_v10, %v1441_v44  ;;  %v1402_v41 = vsub.f32 %v1321_v22, %v3161_v34  ;;  %v3604_v22 = vld [vmem:[#allocation40_spill] sm:$0xff] }
 0x198   :  { %v1318_v21 = vmul.f32 %v3121_v11, %v3593_v49  ;;  %v1405_v56 = vsub.f32 %v1324_v4, %v3178_v5 }
 0x199   :  { %v1258_v1 = vmul.f32 %v1736_v48, %v1257_v13  ;;  %v1380_v13 = vsub.f32 %v1299_v36, %v3176_v32  ;;  %v1506_v20 = vadd.f32 %v1505_v28, %v1442_v25  ;;  %v3602_v36 = vld [vmem:[#allocation14_spill] sm:$0xff]  ;;  %v1466_v6 = vmul.f32 %v1402_v41, %v1402_v41 }
 0x19a   :  { %v1399_v51 = vsub.f32 %v1318_v21, %v3149_v53  ;;  %v1323_v59 = vmul.f32 %v3121_v11, %v3602_v36  ;;  %v1445_v21 = vmul.f32 %v1381_v9, %v1381_v9  ;;  %v1283_v11 = vsel %vm3326_vm14, %v3207_v26, %v1278_v38  ;;  %v3605_v9 = vld [vmem:[#allocation41_spill] sm:$0xff] }
 0x19b   :  { %v1259_v19 = vadd.f32 %v1736_v48, %v1258_v1  ;;  %v1400_v1 = vsub.f32 %v1319_v60, %v3152_v62  ;;  %v1444_v54 = vmul.f32 %v1380_v13, %v1380_v13  ;;  %v1507_v16 = vadd.f32 %v1506_v20, %v1443_v29 }
 0x19c   :  { %v1463_v18 = vmul.f32 %v1399_v51, %v1399_v51  ;;  %v1403_v60 = vsub.f32 %v1322_v17, %v3174_v39  ;;  %v1341_v33 = vmul.f32 %v1283_v11, %v3604_v22  ;;  %v1342_v29 = vmul.f32 %v1283_v11, %v3605_v9 }
 0x19d   :  { %v1263_v50 = vsel %vm3333_vm15, %v1736_v48, %v1259_v19  ;;  %v1401_v48 = vsub.f32 %v1320_v7, %v3154_v37  ;;  %v1464_v19 = vmul.f32 %v1400_v1, %v1400_v1  ;;  %v1508_v24 = vadd.f32 %v1507_v16, %v1444_v54  ;;  %v3606_v1 = vld [vmem:[#allocation42_spill] sm:$0xff] }
 0x19e   :  { %v1268_v63 = vsel %vm3307_vm13, %v1267_v8, %v1263_v50  ;;  %v1530_v30 = vadd.f32 %v1463_v18, %v1462_v23  ;;  %v1467_v26 = vmul.f32 %v1403_v60, %v1403_v60  ;;  %v1469_v20 = vmul.f32 %v1405_v56, %v1405_v56  ;;  %v3607_v23 = vld [vmem:[#allocation43_spill] sm:$0xff] }
 0x19f   :  { %v1465_v55 = vmul.f32 %v1401_v48, %v1401_v48  ;;  %v1333_v27 = vmul.f32 %v1268_v63, %v2960_v57  ;;  %v1334_v61 = vmul.f32 %v1268_v63, %v2963_v40  ;;  %v1335_v49 = vmul.f32 %v1268_v63, %v2970_v3 }
 0x1a0   :  { %v1336_v14 = vmul.f32 %v1268_v63, %v2973_v35  ;;  %v1404_v57 = vsub.f32 %v1323_v59, %v3176_v32  ;;  %v1531_v40 = vadd.f32 %v1530_v30, %v1464_v19  ;;  %v1509_v8 = vadd.f32 %v1508_v24, %v1445_v21  ;;  %v3608_v19 = vld [vmem:[#allocation44_spill] sm:$0xff]  ;;  %v3609_v30 = vld [vmem:[#allocation45_spill] sm:$0xff] }
 0x1a1   :  { %v1414_v3 = vsub.f32 %v1333_v27, %v3147_v42  ;;  %v1337_v44 = vmul.f32 %v1268_v63, %v2981_v43  ;;  %v1415_v10 = vsub.f32 %v1334_v61, %v3149_v53  ;;  %v1416_v35 = vsub.f32 %v1335_v49, %v3152_v62 }
 0x1a2   :  { %v1532_v15 = vadd.f32 %v1531_v40, %v1465_v55  ;;  %v1338_v45 = vmul.f32 %v1268_v63, %v2985_v31  ;;  %1510 = vadd.xlane.f32.xlu0 %v1509_v8  ;;  %v1417_v38 = vsub.f32 %v1336_v14, %v3154_v37  ;;  %v1468_v50 = vmul.f32 %v1404_v57, %v1404_v57  ;;  %v3611_v8 = vld [vmem:[#allocation47_spill] sm:$0xff] }
 0x1a3   :  { %v1478_v2 = vmul.f32 %v1414_v3, %v1414_v3  ;;  %v1479_v7 = vmul.f32 %v1415_v10, %v1415_v10  ;;  %v1339_v43 = vmul.f32 %v1268_v63, %v2989_v46  ;;  %v1340_v13 = vmul.f32 %v1268_v63, %v2993_v0 }
 0x1a4   :  { %v1533_v12 = vadd.f32 %v1532_v15, %v1466_v6  ;;  %v1418_v25 = vsub.f32 %v1337_v44, %v3161_v34  ;;  %v1480_v28 = vmul.f32 %v1416_v35, %v1416_v35  ;;  %v1419_v31 = vsub.f32 %v1338_v45, %v3174_v39 }
 0x1a5   :  { %v1548_v58 = vadd.f32 %v1479_v7, %v1478_v2  ;;  %v1343_v48 = vmul.f32 %v1283_v11, %v3606_v1  ;;  %v1481_v52 = vmul.f32 %v1417_v38, %v1417_v38  ;;  %v1344_v46 = vmul.f32 %v1283_v11, %v3607_v23 }
 0x1a6   :  { %v1534_v51 = vadd.f32 %v1533_v12, %v1467_v26  ;;  %v1420_v0 = vsub.f32 %v1339_v43, %v3176_v32  ;;  %v1422_v63 = vsub.f32 %v1341_v33, %v3147_v42  ;;  %v1423_v36 = vsub.f32 %v1342_v29, %v3149_v53  ;;  %v3610_v53 = vld [vmem:[#allocation46_spill] sm:$0xff] }
 0x1a7   :  { %v1549_v17 = vadd.f32 %v1548_v58, %v1480_v28  ;;  %v1482_v59 = vmul.f32 %v1418_v25, %v1418_v25  ;;  %v1345_v16 = vmul.f32 %v1283_v11, %v3608_v19  ;;  %v1424_v47 = vsub.f32 %v1343_v48, %v3152_v62 }
 0x1a8   :  { %v1535_v54 = vadd.f32 %v1534_v51, %v1468_v50  ;;  %v1421_v41 = vsub.f32 %v1340_v13, %v3178_v5  ;;  %v1483_v55 = vmul.f32 %v1419_v31, %v1419_v31  ;;  %v1346_v27 = vmul.f32 %v1283_v11, %v3609_v30 }
 0x1a9   :  { %v1550_v18 = vadd.f32 %v1549_v17, %v1481_v52  ;;  %v1425_v49 = vsub.f32 %v1344_v46, %v3154_v37  ;;  %v1486_v21 = vmul.f32 %v1422_v63, %v1422_v63  ;;  %v1487_v24 = vmul.f32 %v1423_v36, %v1423_v36 }
 0x1aa   :  { %v1536_v4 = vadd.f32 %v1535_v54, %v1469_v20  ;;  %v1484_v42 = vmul.f32 %v1420_v0, %v1420_v0  ;;  %v1347_v60 = vmul.f32 %v1283_v11, %v3610_v53  ;;  %v1426_v57 = vsub.f32 %v1345_v16, %v3161_v34 }
 0x1ab   :  { %v1551_v61 = vadd.f32 %v1550_v18, %v1482_v59  ;;  %v1488_v40 = vmul.f32 %v1424_v47, %v1424_v47  ;;  %v1557_v62 = vadd.f32 %v1487_v24, %v1486_v21  ;;  %v1485_v3 = vmul.f32 %v1421_v41, %v1421_v41 }
 0x1ac   :  { %1537 = vadd.xlane.f32.xlu0 %v1536_v4  ;;  %v1348_v44 = vmul.f32 %v1283_v11, %v3611_v8  ;;  %v1427_v35 = vsub.f32 %v1346_v27, %v3174_v39  ;;  %v1489_v56 = vmul.f32 %v1425_v49, %v1425_v49  ;;  %v1428_v15 = vsub.f32 %v1347_v60, %v3176_v32 }
 0x1ad   :  { %v1552_v14 = vadd.f32 %v1551_v61, %v1483_v55  ;;  %v1558_v6 = vadd.f32 %v1557_v62, %v1488_v40  ;;  %v1490_v45 = vmul.f32 %v1426_v57, %v1426_v57 }
 0x1ae   :  { %v1429_v38 = vsub.f32 %v1348_v44, %v3178_v5  ;;  %v1491_v2 = vmul.f32 %v1427_v35, %v1427_v35  ;;  %v1492_v7 = vmul.f32 %v1428_v15, %v1428_v15 }
 0x1af   :  { %v1553_v10 = vadd.f32 %v1552_v14, %v1484_v42  ;;  %v1559_v26 = vadd.f32 %v1558_v6, %v1489_v56 }
 0x1b0   :  { %v1493_v12 = vmul.f32 %v1429_v38, %v1429_v38 }
 0x1b1   :  { %v1554_v37 = vadd.f32 %v1553_v10, %v1485_v3  ;;  %v1560_v34 = vadd.f32 %v1559_v26, %v1490_v45 }
 0x1b3   :  { %1555 = vadd.xlane.f32.xlu2 %v1554_v37  ;;  %v1561_v50 = vadd.f32 %v1560_v34, %v1491_v2 }
 0x1b5   :  { %v1562_v43 = vadd.f32 %v1561_v50, %v1492_v7 }
 0x1b7   :  { %v1563_v11 = vadd.f32 %v1562_v43, %v1493_v12 }
 0x1b9   :  { %1564 = vadd.xlane.f32.xlu0 %v1563_v11 }
 0x1f0   :  { %v1520_v39 = vpop.xlane.xlu1 %1519 }
 0x1f1   :  { %v1568_v13 = vmul.f32 0.0009765625, %v1520_v39 }
 0x1f3   :  { %1577 = vst.msk [vmem:[%s3435_s2 + $0x10] sm:$0xff] %vm1574_vm0, %v1568_v13 }
 0x1f4   :  { %v1502_v32 = vpop.xlane.xlu2 %1501 }
 0x1f5   :  { %v1566_v25 = vmul.f32 0.0009765625, %v1502_v32 }
 0x1f7   :  { %1575 = vst.msk [vmem:[%s3435_s2] sm:$0xff] %vm1574_vm0, %v1566_v25 }
 0x1fa   :  { %v1547_v5 = vpop.xlane.xlu1 %1546 }
 0x1fb   :  { %v1571_v28 = vmul.f32 0.0009765625, %v1547_v5 }
 0x1fd   :  { %1580 = vst.msk [vmem:[%s3435_s2 + $0x28] sm:$0xff] %vm1574_vm0, %v1571_v28 }
 0x204   :  { %v1529_v58 = vpop.xlane.xlu2 %1528 }
 0x205   :  { %v1569_v22 = vmul.f32 0.0009765625, %v1529_v58 }
 0x207   :  { %1578 = vst.msk [vmem:[%s3435_s2 + $0x18] sm:$0xff] %vm1574_vm0, %v1569_v22 }
 0x215   :  { %v1511_v33 = vpop.xlane.xlu0 %1510 }
 0x216   :  { %v1567_v51 = vmul.f32 0.0009765625, %v1511_v33 }
 0x218   :  { %1576 = vst.msk [vmem:[%s3435_s2 + $0x8] sm:$0xff] %vm1574_vm0, %v1567_v51 }
 0x21f   :  { %v1538_v31 = vpop.xlane.xlu0 %1537 }
 0x220   :  { %v1570_v9 = vmul.f32 0.0009765625, %v1538_v31 }
 0x222   :  { %1579 = vst.msk [vmem:[%s3435_s2 + $0x20] sm:$0xff] %vm1574_vm0, %v1570_v9 }
 0x226   :  { %v1556_v29 = vpop.xlane.xlu2 %1555 }
 0x227   :  { %v1572_v1 = vmul.f32 0.0009765625, %v1556_v29 }
 0x229   :  { %1581 = vst.msk [vmem:[%s3435_s2 + $0x30] sm:$0xff] %vm1574_vm0, %v1572_v1 }
 0x22c   :  { %v1565_v48 = vpop.xlane.xlu0 %1564 }
 0x22d   :  { %v1573_v20 = vmul.f32 0.0009765625, %v1565_v48 }
 0x22f   :  { %1582 = vst.msk [vmem:[%s3435_s2 + $0x38] sm:$0xff] %vm1574_vm0, %v1573_v20 }
 0x230   :  { %1587 = vsyncpa [#allocation3], 1 }
 0x231   :  { %1588 = vsyncpa [#allocation5], 1 }

</bundles_post_ra>
